<compile_context>
chip_gen: v7x
topology: tpu7x:2x2x1
jax: 0.10.0
libtpu: 0.0.40
codegen_flags: <defaults>
</compile_context>

<pallas_src>
import math
import functools

import jax
import jax.numpy as jnp
from jax.experimental import pallas as pl
from jax.experimental.pallas import tpu as pltpu


def _attn_kernel(q_ref, vid_ref, wk_ref, bk_ref, wv_ref, bv_ref,
                 wo_ref, bo_ref, out_ref, *, num_heads, head_dim):
    """One grid step handles a block of Vb videos.

    q_ref:   (H, T, D)  bf16, pre-projected, pre-scaled by 1/sqrt(D), grid-invariant
    vid_ref: (Vb, F, E) bf16, this step's videos
    w*_ref:  (E, E)     bf16, pre-transposed to (in, out)
    b*_ref:  (1, E)     f32
    out_ref: (Vb, T, E)
    """
    Vb, F, E = vid_ref.shape
    H, T, D = q_ref.shape

    # --- k / v projections: single full-depth (Vb*F, E) x (E, E) bf16 MXU matmuls.
    # (Vb, F, E) -> (Vb*F, E) is a layout no-op when F is a multiple of 16
    # (bf16 sublane packing); the wrapper/demo keeps F % 16 == 0.
    vid = vid_ref[...].reshape(Vb * F, E)
    k = jnp.dot(vid, wk_ref[...], preferred_element_type=jnp.float32) + bk_ref[...]
    v = jnp.dot(vid, wv_ref[...], preferred_element_type=jnp.float32) + bv_ref[...]

    # --- relayout to head-major ONCE per step (not once per head): (Vb*H, F, D).
    k_b = (k.astype(jnp.bfloat16).reshape(Vb, F, H, D)
            .transpose(0, 2, 1, 3).reshape(Vb * H, F, D))
    v_b = (v.astype(jnp.bfloat16).reshape(Vb, F, H, D)
            .transpose(0, 2, 1, 3).reshape(Vb * H, F, D))

    # q broadcast over this step's videos, once for all heads (not per head).
    q_b = jnp.broadcast_to(q_ref[...].reshape(1, H, T, D),
                           (Vb, H, T, D)).reshape(Vb * H, T, D)

    # --- head-batched logits + softmax over frames (lane axis), all in f32.
    logits = jnp.einsum('btd,bfd->btf', q_b, k_b,
                        preferred_element_type=jnp.float32)        # (Vb*H, T, F)
    m = jnp.max(logits, axis=-1, keepdims=True)
    p = jnp.exp(logits - m)
    s = jnp.sum(p, axis=-1, keepdims=True)
    # EUP approx reciprocal is well inside the demo tolerance; switch to an exact
    # divide if production requires bit-accurate softmax normalization.
    w = p * pl.reciprocal(s, approx=True)

    attn = jnp.einsum('btf,bfd->btd', w.astype(jnp.bfloat16), v_b,
                      preferred_element_type=jnp.float32)          # (Vb*H, T, D)

    # --- merge heads once, then a single full-depth (K = E) output projection.
    attn_m = (attn.astype(jnp.bfloat16).reshape(Vb, H, T, D)
                  .transpose(0, 2, 1, 3).reshape(Vb * T, E))
    o = jnp.dot(attn_m, wo_ref[...], preferred_element_type=jnp.float32) + bo_ref[...]
    out_ref[...] = o.reshape(Vb, T, E).astype(out_ref.dtype)


def _pick_block_v(num_vids, num_frames, target_rows=512):
    """Largest block_v dividing V with block_v*F near target_rows MXU rows, while
    keeping at least two grid steps when possible (v7x has 2 TensorCores/chip)."""
    bv = max(1, min(num_vids, target_rows // max(num_frames, 1)))
    while num_vids % bv:
        bv -= 1
    if bv == num_vids and num_vids >= 2:
        bv = num_vids // 2
        while num_vids % bv:
            bv -= 1
    return max(bv, 1)


def multi_headed_attention(text_embeds, video_embeds, params, num_heads,
                           block_v=None):
    T, E = text_embeds.shape
    V, F, _ = video_embeds.shape
    assert E % num_heads == 0
    head_dim = E // num_heads
    out_dtype = text_embeds.dtype

    if block_v is None:
        block_v = _pick_block_v(V, F)
    while V % block_v:
        block_v -= 1

    # nn.Linear stores W as (out, in); transpose once host-side so the kernel does
    # x @ W, and pre-cast matmul operands to bf16 (MXU-native on v5e/v6e/v7x).
    wk_t = params["wk"].T.astype(jnp.bfloat16)
    wv_t = params["wv"].T.astype(jnp.bfloat16)
    wo_t = params["wo"].T.astype(jnp.bfloat16)
    bk = params["bk"].astype(jnp.float32)
    bv_ = params["bv"].astype(jnp.float32)
    bo = params["bo"].astype(jnp.float32)

    # q projection is shared by every video: compute it once in plain XLA (cheaper
    # than a dedicated pallas_call at small T), fold in 1/sqrt(D) while still f32,
    # split heads, and ship a grid-invariant (H, T, D) bf16 block to the kernel.
    q = (text_embeds.astype(jnp.float32) @ params["wq"].T.astype(jnp.float32)
         + params["bq"][0].astype(jnp.float32))
    q = q * (1.0 / math.sqrt(head_dim))
    q_heads = (q.reshape(T, num_heads, head_dim)
                .transpose(1, 0, 2).astype(jnp.bfloat16))

    video_bf16 = video_embeds.astype(jnp.bfloat16)   # halves HBM->VMEM DMA bytes

    grid = (V // block_v,)

    def invariant(shape):      # grid-invariant operand: fetch once, single buffer
        return pl.BlockSpec(shape, lambda i: (0,) * len(shape),
                            pipeline_mode=pl.Buffered(1))

    kernel = functools.partial(_attn_kernel, num_heads=num_heads,
                               head_dim=head_dim)

    flops = (2 * 2 * V * F * E * E          # k, v projections
             + 4 * V * T * F * E            # logits + weighted sum (all heads)
             + 2 * V * T * E * E)           # output projection
    bytes_accessed = (V * F * E * 2 + V * T * E * jnp.dtype(out_dtype).itemsize
                      + 3 * E * E * 2 + 3 * E * 4 + num_heads * T * head_dim * 2)
    cost = pl.CostEstimate(flops=flops, transcendentals=V * num_heads * T * F,
                           bytes_accessed=int(bytes_accessed))

    # Explicit VMEM budget: double-buffered video/out blocks + single-buffered
    # invariants + f32 intermediates, kept above v5e's 16 MiB scoped default and
    # below v7x's 64 MiB physical VMEM.
    step_bytes = (2 * block_v * F * E * 2 + 2 * block_v * T * E * 4
                  + 3 * E * E * 2 + 10 * block_v * F * E * 4)
    vmem_limit = int(min(56 * 2 ** 20, max(32 * 2 ** 20, 2 * step_bytes)))

    return pl.pallas_call(
        kernel,
        out_shape=jax.ShapeDtypeStruct((V, T, E), out_dtype),
        grid_spec=pltpu.PrefetchScalarGridSpec(
            num_scalar_prefetch=0,
            grid=grid,
            in_specs=[
                invariant((num_heads, T, head_dim)),                  # q (shared)
                pl.BlockSpec((block_v, F, E), lambda i: (i, 0, 0)),   # video block
                invariant((E, E)), invariant((1, E)),                 # k_proj
                invariant((E, E)), invariant((1, E)),                 # v_proj
                invariant((E, E)), invariant((1, E)),                 # out_proj
            ],
            out_specs=pl.BlockSpec((block_v, T, E), lambda i: (i, 0, 0)),
        ),
        compiler_params=pltpu.CompilerParams(
            dimension_semantics=("parallel",),
            vmem_limit_bytes=vmem_limit),
        cost_estimate=cost,
    )(q_heads, video_bf16, wk_t, bk, wv_t, bv_, wo_t, bo)


def reference(text_embeds, video_embeds, params, num_heads):
    """Pure-JAX f32 replica of the PyTorch forward for validation."""
    T, E = text_embeds.shape
    V, F, _ = video_embeds.shape
    D = E // num_heads
    q = text_embeds @ params["wq"].T + params["bq"][0]              # (T, E)
    q = q.reshape(T, num_heads, D).transpose(1, 2, 0)               # (H, D, T)
    k = video_embeds @ params["wk"].T + params["bk"][0]             # (V, F, E)
    k = k.reshape(V, F, num_heads, D).transpose(0, 2, 1, 3)         # (V, H, F, D)
    v = video_embeds @ params["wv"].T + params["bv"][0]
    v = v.reshape(V, F, num_heads, D).transpose(0, 2, 3, 1)         # (V, H, D, F)
    logits = jnp.einsum("vhfd,hdt->vhft", k, q) / math.sqrt(D)      # (V, H, F, T)
    w = jax.nn.softmax(logits, axis=2)
    attn = jnp.einsum("vhdf,vhft->vhdt", v, w)                      # (V, H, D, T)
    attn = attn.transpose(0, 3, 1, 2).reshape(V, T, E)              # (V, T, E)
    return attn @ params["wo"].T + params["bo"][0]


if __name__ == "__main__":
    # Small shapes consistent with the module: T texts, V videos, F frames (multiple
    # of 16 for the bf16 reshape), E embed dim (multiple of 128 -> lane-dense), H heads.
    T, V, F, E, H = 8, 8, 16, 128, 4

    key = jax.random.PRNGKey(0)
    keys = jax.random.split(key, 10)

    text_embeds = jax.random.normal(keys[0], (T, E), dtype=jnp.float32)
    video_embeds = jax.random.normal(keys[1], (V, F, E), dtype=jnp.float32)

    def linear_init(kw, kb):
        w = jax.random.normal(kw, (E, E), dtype=jnp.float32) * 0.05
        b = jax.random.normal(kb, (1, E), dtype=jnp.float32) * 0.01
        return w, b

    wq, bq = linear_init(keys[2], keys[3])
    wk, bk = linear_init(keys[4], keys[5])
    wv, bv = linear_init(keys[6], keys[7])
    wo, bo = linear_init(keys[8], keys[9])
    params = dict(wq=wq, bq=bq, wk=wk, bk=bk, wv=wv, bv=bv, wo=wo, bo=bo)

    out = multi_headed_attention(text_embeds, video_embeds, params, H)
    out = jax.block_until_ready(out)

    ref = reference(text_embeds, video_embeds, params, H)
    assert out.shape == (V, T, E), out.shape
    max_err = float(jnp.max(jnp.abs(out - ref)))
    # bf16 MXU operands (f32 accumulation / f32 softmax) -> ~1e-2-level differences
    # vs the all-f32 reference.
    assert jnp.allclose(out, ref, atol=2e-2, rtol=2e-2), f"max abs err {max_err}"

    print("KERNEL_OK")
</pallas_src>

<mosaic_0001>
module attributes {stable_mosaic.version = 11 : i64} {
  func.func @_attn_kernel(%arg0: i32, %arg1: memref<4x8x32xbf16, #tpu.memory_space<vmem>>, %arg2: memref<4x16x128xbf16, #tpu.memory_space<vmem>>, %arg3: memref<128x128xbf16, #tpu.memory_space<vmem>>, %arg4: memref<1x128xf32, #tpu.memory_space<vmem>>, %arg5: memref<128x128xbf16, #tpu.memory_space<vmem>>, %arg6: memref<1x128xf32, #tpu.memory_space<vmem>>, %arg7: memref<128x128xbf16, #tpu.memory_space<vmem>>, %arg8: memref<1x128xf32, #tpu.memory_space<vmem>>, %arg9: memref<4x8x128xf32, #tpu.memory_space<vmem>>) attributes {dimension_semantics = [#tpu.dimension_semantics<parallel>], iteration_bounds = array<i64: 2>, scalar_prefetch = 0 : i64, scratch_operands = 0 : i64, tpu.core_type = #tpu.core_type<tc>, window_params = [{pipeline_mode = #tpu.pipeline_mode<synchronous>, transform_indices = @transform_0, window_bounds = array<i64: 4, 8, 32>}, {transform_indices = @transform_1, window_bounds = array<i64: 4, 16, 128>}, {pipeline_mode = #tpu.pipeline_mode<synchronous>, transform_indices = @transform_2, window_bounds = array<i64: 128, 128>}, {pipeline_mode = #tpu.pipeline_mode<synchronous>, transform_indices = @transform_3, window_bounds = array<i64: 1, 128>}, {pipeline_mode = #tpu.pipeline_mode<synchronous>, transform_indices = @transform_4, window_bounds = array<i64: 128, 128>}, {pipeline_mode = #tpu.pipeline_mode<synchronous>, transform_indices = @transform_5, window_bounds = array<i64: 1, 128>}, {pipeline_mode = #tpu.pipeline_mode<synchronous>, transform_indices = @transform_6, window_bounds = array<i64: 128, 128>}, {pipeline_mode = #tpu.pipeline_mode<synchronous>, transform_indices = @transform_7, window_bounds = array<i64: 1, 128>}, {transform_indices = @transform_8, window_bounds = array<i64: 4, 8, 128>}]} {
    %c0 = arith.constant 0 : index
    %c0_0 = arith.constant 0 : index
    %c0_1 = arith.constant 0 : index
    %0 = vector.load %arg2[%c0, %c0_0, %c0_1] : memref<4x16x128xbf16, #tpu.memory_space<vmem>>, vector<4x16x128xbf16>
    %1 = vector.shape_cast %0 : vector<4x16x128xbf16> to vector<64x128xbf16>
    %c0_2 = arith.constant 0 : index
    %c0_3 = arith.constant 0 : index
    %2 = vector.load %arg3[%c0_2, %c0_3] : memref<128x128xbf16, #tpu.memory_space<vmem>>, vector<128x128xbf16>
    %cst = arith.constant dense<0.000000e+00> : vector<64x128xf32>
    %3 = tpu.matmul %1, %2, %cst {dimension_numbers = #tpu.dot_dimension_numbers<[1], [0], [0], [1], [0, 0, 1, 1], [], []>} : vector<64x128xbf16>, vector<128x128xbf16>, vector<64x128xf32> -> vector<64x128xf32>
    %c0_4 = arith.constant 0 : index
    %c0_5 = arith.constant 0 : index
    %4 = vector.load %arg4[%c0_4, %c0_5] : memref<1x128xf32, #tpu.memory_space<vmem>>, vector<1x128xf32>
    %5 = vector.broadcast %4 : vector<1x128xf32> to vector<64x128xf32>
    %6 = arith.addf %3, %5 : vector<64x128xf32>
    %c0_6 = arith.constant 0 : index
    %c0_7 = arith.constant 0 : index
    %7 = vector.load %arg5[%c0_6, %c0_7] : memref<128x128xbf16, #tpu.memory_space<vmem>>, vector<128x128xbf16>
    %cst_8 = arith.constant dense<0.000000e+00> : vector<64x128xf32>
    %8 = tpu.matmul %1, %7, %cst_8 {dimension_numbers = #tpu.dot_dimension_numbers<[1], [0], [0], [1], [0, 0, 1, 1], [], []>} : vector<64x128xbf16>, vector<128x128xbf16>, vector<64x128xf32> -> vector<64x128xf32>
    %c0_9 = arith.constant 0 : index
    %c0_10 = arith.constant 0 : index
    %9 = vector.load %arg6[%c0_9, %c0_10] : memref<1x128xf32, #tpu.memory_space<vmem>>, vector<1x128xf32>
    %10 = vector.broadcast %9 : vector<1x128xf32> to vector<64x128xf32>
    %11 = arith.addf %8, %10 : vector<64x128xf32>
    %12 = arith.truncf %6 : vector<64x128xf32> to vector<64x128xbf16>
    %13 = vector.shape_cast %12 : vector<64x128xbf16> to vector<4x16x4x32xbf16>
    %14 = tpu.transpose %13, [0, 2, 1, 3] : vector<4x16x4x32xbf16> -> vector<4x4x16x32xbf16>
    %15 = vector.shape_cast %14 : vector<4x4x16x32xbf16> to vector<16x16x32xbf16>
    %16 = arith.truncf %11 : vector<64x128xf32> to vector<64x128xbf16>
    %17 = vector.shape_cast %16 : vector<64x128xbf16> to vector<4x16x4x32xbf16>
    %18 = tpu.transpose %17, [0, 2, 1, 3] : vector<4x16x4x32xbf16> -> vector<4x4x16x32xbf16>
    %19 = vector.shape_cast %18 : vector<4x4x16x32xbf16> to vector<16x16x32xbf16>
    %c0_11 = arith.constant 0 : index
    %c0_12 = arith.constant 0 : index
    %c0_13 = arith.constant 0 : index
    %20 = vector.load %arg1[%c0_11, %c0_12, %c0_13] : memref<4x8x32xbf16, #tpu.memory_space<vmem>>, vector<4x8x32xbf16>
    %21 = vector.shape_cast %20 : vector<4x8x32xbf16> to vector<1x4x8x32xbf16>
    %22 = vector.shape_cast %21 : vector<1x4x8x32xbf16> to vector<1x4x8x32xbf16>
    %23 = vector.broadcast %22 : vector<1x4x8x32xbf16> to vector<4x4x8x32xbf16>
    %24 = vector.shape_cast %23 : vector<4x4x8x32xbf16> to vector<16x8x32xbf16>
    "tpu.trace_start"() <{level = 10 : i32, message = "btd,bfd->btf"}> : () -> ()
    %cst_14 = arith.constant dense<0.000000e+00> : vector<16x8x16xf32>
    %25 = tpu.matmul %24, %15, %cst_14 {dimension_numbers = #tpu.dot_dimension_numbers<[2], [2], [1], [1], [0, 0, 0, 1, 1, 1], [0], [0]>} : vector<16x8x32xbf16>, vector<16x16x32xbf16>, vector<16x8x16xf32> -> vector<16x8x16xf32>
    "tpu.trace_stop"() : () -> ()
    %cst_15 = arith.constant dense<0xFF800000> : vector<16x8xf32>
    %26 = vector.multi_reduction <maximumf>, %25, %cst_15 [2] : vector<16x8x16xf32> to vector<16x8xf32>
    %27 = vector.shape_cast %26 : vector<16x8xf32> to vector<16x8x1xf32>
    %28 = vector.broadcast %27 : vector<16x8x1xf32> to vector<16x8x16xf32>
    %29 = arith.subf %25, %28 : vector<16x8x16xf32>
    %30 = math.exp %29 : vector<16x8x16xf32>
    %cst_16 = arith.constant dense<0.000000e+00> : vector<16x8xf32>
    %31 = vector.multi_reduction <add>, %30, %cst_16 [2] : vector<16x8x16xf32> to vector<16x8xf32>
    %32 = vector.shape_cast %31 : vector<16x8xf32> to vector<16x8x1xf32>
    %33 = tpu.reciprocal %32 {approx = true} : vector<16x8x1xf32> -> vector<16x8x1xf32>
    %34 = vector.broadcast %33 : vector<16x8x1xf32> to vector<16x8x16xf32>
    %35 = arith.mulf %30, %34 : vector<16x8x16xf32>
    %36 = arith.truncf %35 : vector<16x8x16xf32> to vector<16x8x16xbf16>
    "tpu.trace_start"() <{level = 10 : i32, message = "btf,bfd->btd"}> : () -> ()
    %cst_17 = arith.constant dense<0.000000e+00> : vector<16x8x32xf32>
    %37 = tpu.matmul %36, %19, %cst_17 {dimension_numbers = #tpu.dot_dimension_numbers<[2], [1], [1], [2], [0, 0, 0, 1, 1, 2], [0], [0]>} : vector<16x8x16xbf16>, vector<16x16x32xbf16>, vector<16x8x32xf32> -> vector<16x8x32xf32>
    "tpu.trace_stop"() : () -> ()
    %38 = arith.truncf %37 : vector<16x8x32xf32> to vector<16x8x32xbf16>
    %39 = vector.shape_cast %38 : vector<16x8x32xbf16> to vector<4x4x8x32xbf16>
    %40 = tpu.transpose %39, [0, 2, 1, 3] : vector<4x4x8x32xbf16> -> vector<4x8x4x32xbf16>
    %41 = vector.shape_cast %40 : vector<4x8x4x32xbf16> to vector<32x128xbf16>
    %c0_18 = arith.constant 0 : index
    %c0_19 = arith.constant 0 : index
    %42 = vector.load %arg7[%c0_18, %c0_19] : memref<128x128xbf16, #tpu.memory_space<vmem>>, vector<128x128xbf16>
    %cst_20 = arith.constant dense<0.000000e+00> : vector<32x128xf32>
    %43 = tpu.matmul %41, %42, %cst_20 {dimension_numbers = #tpu.dot_dimension_numbers<[1], [0], [0], [1], [0, 0, 1, 1], [], []>} : vector<32x128xbf16>, vector<128x128xbf16>, vector<32x128xf32> -> vector<32x128xf32>
    %c0_21 = arith.constant 0 : index
    %c0_22 = arith.constant 0 : index
    %44 = vector.load %arg8[%c0_21, %c0_22] : memref<1x128xf32, #tpu.memory_space<vmem>>, vector<1x128xf32>
    %45 = vector.broadcast %44 : vector<1x128xf32> to vector<32x128xf32>
    %46 = arith.addf %43, %45 : vector<32x128xf32>
    %47 = vector.shape_cast %46 : vector<32x128xf32> to vector<4x8x128xf32>
    %c0_23 = arith.constant 0 : index
    %c0_24 = arith.constant 0 : index
    %c0_25 = arith.constant 0 : index
    %48 = vector.load %arg9[%c0_23, %c0_24, %c0_25] : memref<4x8x128xf32, #tpu.memory_space<vmem>>, vector<4x8x128xf32>
    tpu.vector_store %arg9[%c0_23, %c0_24, %c0_25], %47 {strides = array<i32>} : memref<4x8x128xf32, #tpu.memory_space<vmem>>, vector<4x8x128xf32>,
    return
  }
  func.func @transform_0(%arg0: i32) -> (i32, i32, i32) {
    %c0_i32 = arith.constant 0 : i32
    %c0_i32_0 = arith.constant 0 : i32
    %c0_i32_1 = arith.constant 0 : i32
    %c0_i32_2 = arith.constant 0 : i32
    return %c0_i32, %c0_i32_0, %c0_i32_1 : i32, i32, i32
  }
  func.func @transform_1(%arg0: i32) -> (i32, i32, i32) {
    %c0_i32 = arith.constant 0 : i32
    %c0_i32_0 = arith.constant 0 : i32
    %c0_i32_1 = arith.constant 0 : i32
    return %arg0, %c0_i32, %c0_i32_0 : i32, i32, i32
  }
  func.func @transform_2(%arg0: i32) -> (i32, i32) {
    %c0_i32 = arith.constant 0 : i32
    %c0_i32_0 = arith.constant 0 : i32
    %c0_i32_1 = arith.constant 0 : i32
    return %c0_i32, %c0_i32_0 : i32, i32
  }
  func.func @transform_3(%arg0: i32) -> (i32, i32) {
    %c0_i32 = arith.constant 0 : i32
    %c0_i32_0 = arith.constant 0 : i32
    %c0_i32_1 = arith.constant 0 : i32
    return %c0_i32, %c0_i32_0 : i32, i32
  }
  func.func @transform_4(%arg0: i32) -> (i32, i32) {
    %c0_i32 = arith.constant 0 : i32
    %c0_i32_0 = arith.constant 0 : i32
    %c0_i32_1 = arith.constant 0 : i32
    return %c0_i32, %c0_i32_0 : i32, i32
  }
  func.func @transform_5(%arg0: i32) -> (i32, i32) {
    %c0_i32 = arith.constant 0 : i32
    %c0_i32_0 = arith.constant 0 : i32
    %c0_i32_1 = arith.constant 0 : i32
    return %c0_i32, %c0_i32_0 : i32, i32
  }
  func.func @transform_6(%arg0: i32) -> (i32, i32) {
    %c0_i32 = arith.constant 0 : i32
    %c0_i32_0 = arith.constant 0 : i32
    %c0_i32_1 = arith.constant 0 : i32
    return %c0_i32, %c0_i32_0 : i32, i32
  }
  func.func @transform_7(%arg0: i32) -> (i32, i32) {
    %c0_i32 = arith.constant 0 : i32
    %c0_i32_0 = arith.constant 0 : i32
    %c0_i32_1 = arith.constant 0 : i32
    return %c0_i32, %c0_i32_0 : i32, i32
  }
  func.func @transform_8(%arg0: i32) -> (i32, i32, i32) {
    %c0_i32 = arith.constant 0 : i32
    %c0_i32_0 = arith.constant 0 : i32
    %c0_i32_1 = arith.constant 0 : i32
    return %arg0, %c0_i32, %c0_i32_0 : i32, i32, i32
  }
}

</mosaic_0001>

<bundles_post_ra>
// kernel: tpu_custom_call.1
= control target key start
LH: loop header
LB: loop body
LE: loop exit
PB: predicated region body
PF: predicated region fallthrough
CT: control target
= control target key end

     0   :  { %13 = vsyncpa [#allocation3], 0  ;;  %s7653_s0 = inlined_call_operand.hbm [shape: bf16[4,8,32], index: 0, kind: input, shape index: {}]   ;;  %s7654_s1 = inlined_call_operand.hbm [shape: bf16[8,16,128], index: 1, kind: input, shape index: {}]   ;;  %s7655_s2 = inlined_call_operand.hbm [shape: bf16[128,128], index: 2, kind: input, shape index: {}]   ;;  %s7656_s3 = inlined_call_operand.vmem [shape: f32[1,128], index: 3, kind: input, shape index: {}]   ;;  %s7657_s4 = inlined_call_operand.hbm [shape: bf16[128,128], index: 4, kind: input, shape index: {}]   ;;  %s7658_s5 = inlined_call_operand.vmem [shape: f32[1,128], index: 5, kind: input, shape index: {}]   ;;  %s7659_s6 = inlined_call_operand.hbm [shape: bf16[128,128], index: 6, kind: input, shape index: {}]   ;;  %s7660_s7 = inlined_call_operand.vmem [shape: f32[1,128], index: 7, kind: input, shape index: {}]   ;;  %s7661_s8 = inlined_call_operand.hbm [shape: f32[8,8,128], index: 8, kind: output, shape index: {}]  }
   0x1   :  { %14 = vsyncpa [#allocation6], 0 }
   0x2   :  { %16 = vsyncpa [#allocation6 + $0x1], 0 }
   0x3   :  { %17 = vsyncpa [#allocation9], 0 }
   0x4   :  { %18 = vsyncpa [#allocation4], 0 }
   0x5   :  { %20 = vsyncpa [#allocation4 + $0x1], 0  ;;  %s6302_s27 = smov 0   ;;  %s6304_s28 = smov 0  }
   0x6   :  { %s6306_s29 = smov 0   ;;  %s6308_s30 = smov 0  }
   0x7 LB: > { %7667 = sst [smem:[#allocation17_spill]] %s6225_s27  ;;  %s6323_s9 = sadd.s32 4294967295, %s6237_s30   ;;  %s6237_s30 = sphi %s6308_s30, %s7692_s30   ;;  %s6233_s29 = sphi %s6306_s29, %s7691_s29   ;;  %s6229_s28 = sphi %s6304_s28, %s7690_s28   ;;  %s6225_s27 = sphi %s6302_s27, %s7689_s27  }
   0x8   : > { %s5347_s10 = sadd.s32 4294967294, %s6237_s30   ;;  %p67_p0 = scmp.ne.s32.totalorder %s6229_s28, %s6225_s27 }
   0x9   : > { %p7662_p1 = scmp.eq.s32.totalorder %s6323_s9, 0  ;;  %p223_p3 = scmp.eq.s32.totalorder %s5347_s10, 1 }
   0xa   : > { %p5348_p5 = scmp.ge.s32.totalorder %s6237_s30, 1  ;;  %p230_p7 = scmp.lt.s32.totalorder %s6237_s30, 3 }
   0xb   : > { %p6332_p4 = por %p7662_p1, %p67_p0  ;;  %p6337_p6 = por %p223_p3, %p67_p0 }
   0xc   : > { %p6342_p8 = pnand %p5348_p5, %p230_p7  ;;  %s6239_s14 = smov [#allocation7]  }
   0xd   : > { %s7668_s11 = scalar_select %p6332_p4, 1, 0 }
   0xe   : > { %s7669_s12 = scalar_select %p6337_p6, 1, 0 }
   0xf   : > { %s7671_s13 = scalar_select %p6342_p8, 1, 0 }
  0x10   : > { %7670 = sst [smem:[#allocation18_spill]] %s7669_s12  ;;  %p5846_p10 = pneg %p6342_p8 }
  0x11   : > { %s255_s15 = sshll.u32 %s6239_s14, 4  ;;  %s6240_s17 = smov [#allocation8]   ;;  %s6349_s15 = int_to_ptr.vmem [resolvable:$true] %s255_s15 }
  0x12   : > { %p6353_p11 = pnand %p5846_p10, %p7662_p1  ;;  %s271_s18 = sshll.u32 %s6240_s17, 4  ;;  %s6357_s18 = int_to_ptr.vmem [resolvable:$true] %s271_s18 }
  0x13   : > { %s6241_s19 = smov [#allocation2]   ;;  %s6017_s23 = scalar_lea.hbm %s7655_s2, 1024 }
  0x14   : > { %s6359_s20 = sshll.u32 %s6241_s19, 4  ;;  %p6018_p12 = scmp.ne.s32.totalorder %s7655_s2, %s6017_s23  ;;  %s243_s20 = int_to_ptr.vmem [resolvable:$true] %s6359_s20 }
  0x15   : > { %p6369_p13 = pneg %p6353_p11  ;;  %p6024_p5 = scmp.lt.u32.totalorder %s6017_s23, %s7655_s2 }
  0x17   : > { %p6020_p0 = pnand %p6369_p13, %p6018_p12 }
  0x19   : > { %p6021_p3 = pneg %p6020_p0 }
  0x1b   : > { %p6026_p7 = pnand %p6024_p5, %p6021_p3 }
  0x1d   : > { %6029 = shalt.err (!%p6026_p7)
}
  0x1e   : > { %s6030_s17 = scalar_lea.vmem %s6349_s15, 1024  ;;  %p6038_p2 = scmp.lt.s32.totalorder %s6349_s15, %s6349_s15 }
  0x1f   : > { %p6031_p10 = scmp.ne.s32.totalorder %s6349_s15, %s6030_s17  ;;  %p6039_p6 = scmp.lt.s32.totalorder %s6030_s17, %s6030_s17 }
  0x21   : > { %p6033_p9 = pnand %p6031_p10, %p6369_p13  ;;  %p6040_p12 = por %p6039_p6, %p6038_p2 }
  0x23   : > { %p6034_p1 = pneg %p6033_p9 }
  0x25   : > { %p6041_p0 = pnand %p6040_p12, %p6034_p1 }
  0x27   : > { %6044 = shalt.err (!%p6041_p0)
}
  0x28   : > { %s6242_s19 = smov 64   ;;  %s6243_s21 = smov 4  }
  0x29   : > { %5852 = dma.hbm_to_vmem [thread:$0]  (!%p6353_p11), %s7655_s2, 1024, %s6349_s15, [#allocation6], %s6242_s19, %s6242_s19, %s6243_s21  }
  0x2a   : > { %s6045_s10 = scalar_lea.hbm %s7657_s4, 1024 }
  0x2b   : > { %p6046_p1 = scmp.ne.s32.totalorder %s7657_s4, %s6045_s10  ;;  %p6052_p9 = scmp.lt.u32.totalorder %s6045_s10, %s7657_s4 }
  0x2d   : > { %p6048_p2 = pnand %p6046_p1, %p6369_p13 }
  0x2f   : > { %p6049_p6 = pneg %p6048_p2 }
  0x31   : > { %p6054_p3 = pnand %p6052_p9, %p6049_p6 }
  0x33   : > { %6057 = shalt.err (!%p6054_p3)
}
  0x34   : > { %s6058_s15 = scalar_lea.vmem %s6357_s18, 1024  ;;  %p6066_p12 = scmp.lt.s32.totalorder %s6357_s18, %s6357_s18 }
  0x35   : > { %p6059_p5 = scmp.ne.s32.totalorder %s6357_s18, %s6058_s15  ;;  %p6067_p0 = scmp.lt.s32.totalorder %s6058_s15, %s6058_s15 }
  0x37   : > { %p6061_p7 = pnand %p6059_p5, %p6369_p13  ;;  %p6068_p1 = por %p6067_p0, %p6066_p12 }
  0x39   : > { %p6062_p10 = pneg %p6061_p7 }
  0x3b   : > { %p6069_p2 = pnand %p6068_p1, %p6062_p10 }
  0x3d   : > { %6072 = shalt.err (!%p6069_p2)
}
  0x3e   : > { %5855 = dma.hbm_to_vmem [thread:$0]  (!%p6353_p11), %s7657_s4, 1024, %s6357_s18, [#allocation9], %s6242_s19, %s6242_s19, %s6243_s21  }
  0x3f   : > { %s6073_s24 = scalar_lea.hbm %s7653_s0, 256 }
  0x40   : > { %p6074_p6 = scmp.ne.s32.totalorder %s7653_s0, %s6073_s24  ;;  %p6080_p5 = scmp.lt.u32.totalorder %s6073_s24, %s7653_s0 }
  0x42   : > { %p6076_p9 = pnand %p6074_p6, %p6369_p13 }
  0x44   : > { %p6077_p3 = pneg %p6076_p9 }
  0x46   : > { %p6082_p7 = pnand %p6080_p5, %p6077_p3 }
  0x48   : > { %6085 = shalt.err (!%p6082_p7)
}
  0x49   : > { %s6086_s15 = scalar_lea.vmem %s243_s20, 256  ;;  %p6094_p1 = scmp.lt.s32.totalorder %s243_s20, %s243_s20 }
  0x4a   : > { %p6087_p10 = scmp.ne.s32.totalorder %s243_s20, %s6086_s15  ;;  %p6095_p2 = scmp.lt.s32.totalorder %s6086_s15, %s6086_s15 }
  0x4c   : > { %p6089_p12 = pnand %p6087_p10, %p6369_p13  ;;  %p6096_p4 = por %p6095_p2, %p6094_p1 }
  0x4e   : > { %p6090_p0 = pneg %p6089_p12 }
  0x50   : > { %p6097_p8 = pnand %p6096_p4, %p6090_p0 }
  0x52   : > { %6100 = shalt.err (!%p6097_p8)
}
  0x53   : > { %5849 = dma.hbm_to_vmem [thread:$0]  (!%p6353_p11), %s7653_s0, 256, %s243_s20, [#allocation3], %s6242_s19, %s6242_s19, %s6243_s21  }
  0x54   : > { %s6244_s12 = smov [#allocation10]   ;;  %s6101_s25 = scalar_lea.hbm %s7659_s6, 1024 }
  0x55   : > { %s287_s22 = sshll.u32 %s6244_s12, 4  ;;  %p6102_p4 = scmp.ne.s32.totalorder %s7659_s6, %s6101_s25  ;;  %s288_s22 = int_to_ptr.vmem [resolvable:$true] %s287_s22 }
  0x56   : > { %p6108_p9 = scmp.lt.u32.totalorder %s6101_s25, %s7659_s6 }
  0x57   : > { %p6104_p8 = pnand %p6102_p4, %p6369_p13 }
  0x59   : > { %p6105_p6 = pneg %p6104_p8 }
  0x5b   : > { %p6110_p3 = pnand %p6108_p9, %p6105_p6 }
  0x5d   : > { %6113 = shalt.err (!%p6110_p3)
}
  0x5e   : > { %s6114_s20 = scalar_lea.vmem %s288_s22, 1024  ;;  %p6122_p12 = scmp.lt.s32.totalorder %s288_s22, %s288_s22 }
  0x5f   : > { %p6115_p5 = scmp.ne.s32.totalorder %s288_s22, %s6114_s20  ;;  %p6123_p0 = scmp.lt.s32.totalorder %s6114_s20, %s6114_s20 }
  0x61   : > { %p6117_p7 = pnand %p6115_p5, %p6369_p13  ;;  %p6124_p1 = por %p6123_p0, %p6122_p12 }
  0x63   : > { %p6118_p10 = pneg %p6117_p7 }
  0x65   : > { %p6125_p2 = pnand %p6124_p1, %p6118_p10 }
  0x67   : > { %6128 = shalt.err (!%p6125_p2)
}
  0x68   : > { %5858 = dma.hbm_to_vmem [thread:$0]  (!%p6353_p11), %s7659_s6, 1024, %s288_s22, [#allocation9], %s6242_s19, %s6242_s19, %s6243_s21  }
  0x69   : > { %s6463_s16 = sadd.s32 1, %s6237_s30   ;;  %s54_s26 = sadd.s32 1, %s6233_s29 }
  0x6a   : > { %s51_s12 = ssub.s32 %s6237_s30, %s6463_s16  ;;  %p61_p13 = scmp.ne.s32.totalorder %s6233_s29, %s6229_s28 }
  0x6b   : > { %p52_p4 = scmp.eq.s32.totalorder %s51_s12, 0  ;;  %p62_p8 = scmp.eq.s32.totalorder %s6237_s30, 0 }
  0x6c   : > { %p7674_p6 = scmp.eq.s32.totalorder %s6323_s9, 1  ;;  %p5871_p3 = scmp.lt.s32.totalorder %s6237_s30, 2 }
  0x6d   : > { %s6479_s24 = scalar_select %p52_p4, %s6233_s29, %s54_s26  }
  0x6e   : > { %p6473_p9 = por %p7674_p6, %p61_p13  ;;  %p63_p5 = por %p62_p8, %p61_p13 }
  0x6f   : > { %s304_s25 = sand.u32 1, %s6237_s30   ;;  %s306_s10 = sand.u32 1, %s6233_s29  }
  0x70   : > { %s5354_s22 = sshll.u32 %s306_s10, 5  ;;  %s5466_s14 = sshll.u32 %s6237_s30, 9 }
  0x71   : > { %s6487_s20 = scalar_lea.hbm %s7654_s1, %s5466_s14  ;;  %s308_s18 = scalar_lea.vmem [#allocation5], %s5354_s22 }
  0x72   : > { %s316_s27 = sshll.u32 %s308_s18, 4  ;;  %p6489_p11 = pnand %p5871_p3, %p63_p5  ;;  %s6493_s27 = int_to_ptr.vmem [resolvable:$true] %s316_s27 }
  0x73   : > { %s6495_s26 = scalar_lea.sflag [#allocation6], %s304_s25  ;;  %s6129_s10 = scalar_lea.hbm %s6487_s20, 512 }
  0x74   : > { %p6130_p7 = scmp.ne.s32.totalorder %s6487_s20, %s6129_s10  ;;  %p6131_p10 = pneg %p6489_p11 }
  0x75   : > { %s6134_s17 = scalar_lea.hbm %s7654_s1, 1024  ;;  %p6135_p1 = scmp.lt.u32.totalorder %s6487_s20, %s7654_s1 }
  0x76   : > { %p6132_p12 = pnand %p6131_p10, %p6130_p7  ;;  %p6136_p2 = scmp.lt.u32.totalorder %s6134_s17, %s6129_s10 }
  0x77   : > { %p6138_p4 = scmp.lt.u32.totalorder %s6129_s10, %s6487_s20 }
  0x78   : > { %p6133_p0 = pneg %p6132_p12  ;;  %p6137_p13 = por %p6136_p2, %p6135_p1 }
  0x7a   : > { %p6139_p8 = por %p6138_p4, %p6137_p13 }
  0x7c   : > { %p6140_p6 = pnand %p6139_p8, %p6133_p0 }
  0x7e   : > { %6143 = shalt.err (!%p6140_p6)
}
  0x7f   : > { %s6144_s25 = scalar_lea.vmem %s6493_s27, 512  ;;  %s6245_s22 = smov [#allocation5]  }
  0x80   : > { %p6145_p3 = scmp.ne.s32.totalorder %s6493_s27, %s6144_s25  ;;  %s6149_s14 = sshll.u32 %s6245_s22, 4  ;;  %s6150_s14 = int_to_ptr.vmem [resolvable:$false] %s6149_s14 }
  0x81   : > { %s6151_s15 = scalar_lea.vmem %s6150_s14, 1024  ;;  %p6152_p12 = scmp.lt.s32.totalorder %s6493_s27, %s6150_s14 }
  0x82   : > { %p6147_p5 = pnand %p6145_p3, %p6131_p10  ;;  %p6153_p1 = scmp.lt.s32.totalorder %s6151_s15, %s6144_s25 }
  0x84   : > { %p6148_p7 = pneg %p6147_p5  ;;  %p6154_p2 = por %p6153_p1, %p6152_p12 }
  0x86   : > { %p6155_p13 = pnand %p6154_p2, %p6148_p7 }
  0x88   : > { %6158 = shalt.err (!%p6155_p13)
}
  0x89   : > { %5862 = dma.hbm_to_vmem [thread:$0]  (!%p6489_p11), %s6487_s20, 512, %s6493_s27, %s6495_s26, %s6242_s19, %s6242_s19, %s6243_s21  }
  0x8a   : > { %p7677_p10 = scmp.ne.s32.totalorder %s7671_s13, 0 }
  0x8b   : > { %p7678_p0 = scmp.eq.s32.totalorder (!%p7677_p10), %s6323_s9, 0 }
  0x8c   : > { %328 = sbr.rel (%p7677_p10) target bundleno = 1852 (0x73c), region = 52 }
  0x93   : > { %6204 = dma.done.wait (%p7678_p0), [#allocation3], 256   ;;  %p7679_p4 = pmov %p7678_p0 }
  0x94   : > { %s334_s12 = sand.u32 1, %s6323_s9   ;;  %s336_s10 = sand.u32 1, %s6229_s28  }
  0x95   : > { %6206 = vsyncadd (%p7679_p4), [#allocation3], 4294967040  ;;  %s6536_s17 = sshll.u32 %s336_s10, 5  ;;  %s335_s19 = scalar_lea.sflag [#allocation6], %s334_s12 }
  0x96   : > { %s6539_s21 = scalar_lea.vmem [#allocation5], %s6536_s17  ;;  %p7680_p11 = scmp.ne.s32.totalorder %s7668_s11, 0 }
  0x98   : > { %6208 = dma.done.wait (%p7680_p11), %s335_s19, 512  }
  0x99   : > { %6210 = vsyncadd (%p7680_p11), %s335_s19, 4294966784  ;;  %p7681_p8 = pmov %p7678_p0 }
  0x9a   : > { %p7682_p6 = pmov %p7678_p0 }
  0x9b   : > { %6212 = dma.done.wait (%p7681_p8), [#allocation6], 1024  }
  0x9c   : > { %6214 = vsyncadd (%p7682_p6), [#allocation6], 4294966272  ;;  %p7683_p3 = pmov %p7678_p0 }
  0x9d   : > { %p7684_p5 = pmov %p7678_p0 }
  0x9e   : > { %6216 = dma.done.wait (%p7683_p3), [#allocation9], 2048  }
  0x9f   : > { %6218 = vsyncadd (%p7684_p5), [#allocation9], 4294965248  ;;  %v5925_v0 = vld [vmem:[#allocation7] sm:$0xff]   ;;  %v5926_v1 = vld [vmem:[#allocation7 + $0x8] sm:$0xff]   ;;  %s6246_s20 = smov 32   ;;  %s6247_s27 = smov 96   ;;  %v796_v57 = vlaneseq }
  0xa0   : > { %5566 = vmatprep.subr.bf16.mxu0 %v5925_v0  ;;  %v5927_v2 = vld [vmem:[#allocation7 + $0x10] sm:$0xff]   ;;  %v5928_v3 = vld [vmem:[#allocation7 + $0x18] sm:$0xff]   ;;  %v5933_v4 = vld [vmem:[%s6539_s21] sm:$0xff]   ;;  %s6248_s26 = smov 64   ;;  %v6249_v41 = vmov 0.0   ;;  %vm6250_vm0 = vmmov 0  }
  0xa1   : > { %5567 = vmatpush3.bf16.msra.mxu0 %v5925_v0  ;;  %5582 = vmatprep.mubr.bf16.mxu0 %v5933_v4  ;;  %v5929_v5 = vld [vmem:[#allocation7 + $0x20] sm:$0xff]   ;;  %v5938_v7 = vld [vmem:[#allocation8 + $0x8] sm:$0xff]   ;;  %v5939_v9 = vld [vmem:[#allocation8 + $0x10] sm:$0xff]   ;;  %v6251_v55 = vmov 1983009808   ;;  %v6252_v0 = vmov 0  }
  0xa2   : > { %5568 = vmatprep.subr.bf16.mxu0 %v5926_v1  ;;  %5606 = vmatprep.mubr.bf16.mxu1 %v5933_v4  ;;  %v5937_v6 = vld [vmem:[#allocation8] sm:$0xff]   ;;  %v5930_v8 = vld [vmem:[#allocation7 + $0x28] sm:$0xff]   ;;  %v5931_v10 = vld [vmem:[#allocation7 + $0x30] sm:$0xff]   ;;  %v794_v56 = vunpack.c.l.s4 %v6251_v55  ;;  %v6253_v4 = vmov 1934713408   ;;  %vm2860_vm1 = vcmask 261120  }
  0xa3   : > { %5590 = vmatprep.subr.bf16.mxu1 %v5937_v6  ;;  %v5940_v11 = vld [vmem:[#allocation8 + $0x18] sm:$0xff]   ;;  %v5941_v13 = vld [vmem:[#allocation8 + $0x20] sm:$0xff]   ;;  %v5942_v14 = vld [vmem:[#allocation8 + $0x28] sm:$0xff]   ;;  %vm3561_vm2 = vcmask 130048   ;;  %vm5084_vm3 = vcmask 523264   ;;  %vm5089_vm4 = vcmask 785408  }
  0xa4   : > { %5591 = vmatpush3.bf16.msra.mxu1 %v5937_v6  ;;  %v5932_v12 = vld [vmem:[#allocation7 + $0x38] sm:$0xff]   ;;  %v5934_v15 = vld [vmem:[%s6539_s21 + $0x8] sm:$0xff]   ;;  %v5935_v16 = vld [vmem:[%s6539_s21 + $0x10] sm:$0xff]   ;;  %v795_v60 = vunpack.c.0.s8 %v794_v56  ;;  %s382_s15 = scalar_lea.vmem [#allocation11], %s6536_s17  ;;  %s5467_s19 = sshll.u32 %s6323_s9, 9 }
  0xa5   : > { %5569 = vmatpush3.bf16.msra.mxu0 %v5926_v1  ;;  %5592 = vmatprep.subr.bf16.mxu1 %v5938_v7  ;;  %v5943_v17 = vld [vmem:[#allocation8 + $0x30] sm:$0xff]   ;;  %v5944_v18 = vld [vmem:[#allocation8 + $0x38] sm:$0xff]   ;;  %v6629_v1 = vpack.i.b16 %v6252_v0, %v6252_v0  ;;  %s5234_s12 = sshll.u32 %s382_s15, 4  ;;  %s7607_s17 = scalar_lea.hbm %s7661_s8, %s5467_s19  ;;  %s7602_s12 = int_to_ptr.vmem [resolvable:$true] %s5234_s12 }
  0xa6   : > { %5570 = vmatprep.subr.bf16.mxu0 %v5927_v2  ;;  %v5936_v19 = vld [vmem:[%s6539_s21 + $0x18] sm:$0xff]   ;;  %v5365_v21 = vld [vmem:[%s7656_s3] ss:$0 sm:$0xff]  ;;  %s7611_s9 = scalar_lea.sflag [#allocation4], %s336_s10  ;;  %s6159_s13 = scalar_lea.vmem %s7602_s12, 512 }
  0xa7   : > { %v6601_v43 = vld [vmem:[%s7658_s5] ss:$0 sm:$0xff]  ;;  %p6160_p7 = scmp.ne.s32.totalorder %s7602_s12, %s6159_s13 }
  0xa8   : > { %5593 = vmatpush3.bf16.msra.mxu1 %v5938_v7 }
  0xa9   : > { %5571 = vmatpush3.bf16.msra.mxu0 %v5927_v2  ;;  %5594 = vmatprep.subr.bf16.mxu1 %v5939_v9  ;;  %v797_v2 = vshrl.u32 %v796_v57, 7  ;;  %p6161_p12 = pnand %p6160_p7, %p6473_p9 }
  0xaa   : > { %5572 = vmatprep.subr.bf16.mxu0 %v5928_v3 }
  0xab   : > { %p6162_p1 = pneg %p6161_p12 }
  0xac   : > { %5595 = vmatpush3.bf16.msra.mxu1 %v5939_v9 }
  0xad   : > { %5573 = vmatpush3.bf16.msra.mxu0 %v5928_v3  ;;  %5596 = vmatprep.subr.bf16.mxu1 %v5940_v11 }
  0xae   : > { %5574 = vmatprep.subr.bf16.mxu0 %v5929_v5 }
  0xb0   : > { %5597 = vmatpush3.bf16.msra.mxu1 %v5940_v11 }
  0xb1   : > { %5575 = vmatpush3.bf16.msra.mxu0 %v5929_v5  ;;  %5598 = vmatprep.subr.bf16.mxu1 %v5941_v13  ;;  %v825_v5 = vunpack.c.l.s4 %v6253_v4 }
  0xb2   : > { %5576 = vmatprep.subr.bf16.mxu0 %v5930_v8 }
  0xb4   : > { %5599 = vmatpush3.bf16.msra.mxu1 %v5941_v13  ;;  %v6638_v13 = vsub.s32 %v795_v60, %v797_v2 }
  0xb5   : > { %5577 = vmatpush3.bf16.msra.mxu0 %v5930_v8  ;;  %5600 = vmatprep.subr.bf16.mxu1 %v5942_v14 }
  0xb6   : > { %5578 = vmatprep.subr.bf16.mxu0 %v5931_v10 }
  0xb8   : > { %5601 = vmatpush3.bf16.msra.mxu1 %v5942_v14 }
  0xb9   : > { %5579 = vmatpush3.bf16.msra.mxu0 %v5931_v10  ;;  %5602 = vmatprep.subr.bf16.mxu1 %v5943_v17 }
  0xba   : > { %5580 = vmatprep.subr.bf16.mxu0 %v5932_v12 }
  0xbc   : > { %5603 = vmatpush3.bf16.msra.mxu1 %v5943_v17 }
  0xbd   : > { %5581 = vmatpush3.bf16.msra.mxu0 %v5932_v12  ;;  %5604 = vmatprep.subr.bf16.mxu1 %v5944_v18 }
  0xbe   : > { %5638 = vmatprep.subr.bf16.mxu0 %v6249_v41 }
  0xc0   : > { %5583 = vmatmul.mubr.bf16.vlgmr.msra.gmra.mrb[0].mxu0 %v5934_v15  ;;  %5605 = vmatpush3.bf16.msra.mxu1 %v5944_v18 }
  0xc1   : > { %5586 = vmatprep.mubr.bf16.mxu0 %v5935_v16  ;;  %5614 = vmatprep.subr.bf16.mxu1 %v6249_v41 }
  0xc3   : > { %5607 = vmatmul.mubr.bf16.vlgmr.msra.gmra.mrb[0].mxu1 %v5934_v15  ;;  %v826_v15 = vunpack.c.0.s8 %v825_v5 }
  0xc4   : > { %5610 = vmatprep.mubr.bf16.mxu1 %v5935_v16 }
  0xc8   : > { %5587 = vmatmul.mubr.bf16.gmra.mrb[4].mxu0 %v5936_v19 }
  0xc9   : > { %5640 = vmatprep.mubr.msk.bf16.mxu0 %vm6250_vm0, %v6249_v41 }
  0xcb   : > { %5611 = vmatmul.mubr.bf16.gmra.mrb[4].mxu1 %v5936_v19 }
  0xcc   : > { %5616 = vmatprep.mubr.msk.bf16.mxu1 %vm6250_vm0, %v6249_v41 }
 0x193   : > { %v5584_v20 = vpop.f32.mrb[0].mxu0 }
 0x194   : > { %v523_v22 = vpop.f32.mrb[1].mxu0  ;;  %v532_v24 = vadd.f32 %v5584_v20, %v5365_v21 }
 0x195   : > { %v5585_v23 = vpop.f32.mrb[2].mxu0  ;;  %v524_v27 = vadd.f32 %v5365_v21, %v523_v22 }
 0x196   : > { %v535_v25 = vadd.f32 %v5585_v23, %v5365_v21  ;;  %v526_v26 = vpop.f32.mrb[3].mxu0  ;;  %v5608_v42 = vpop.f32.mrb[0].mxu1 }
 0x197   : > { %v527_v28 = vadd.f32 %v5365_v21, %v526_v26  ;;  %v668_v44 = vadd.f32 %v5608_v42, %v6601_v43  ;;  %v659_v45 = vpop.f32.mrb[1].mxu1  ;;  %v6646_v26 = vsub.s32 %v826_v15, %v797_v2 }
 0x198   : > { %v6560_v29 = vpack.c.bf16 %v535_v25, %v532_v24  ;;  %v660_v46 = vadd.f32 %v6601_v43, %v659_v45  ;;  %v5609_v47 = vpop.f32.mrb[2].mxu1 }
 0x199   : > { %v6562_v30 = vpack.c.bf16 %v527_v28, %v524_v27  ;;  %v671_v48 = vadd.f32 %v5609_v47, %v6601_v43  ;;  %v662_v49 = vpop.f32.mrb[3].mxu1 }
 0x19a   : > { %v663_v50 = vadd.f32 %v6601_v43, %v662_v49  ;;  %v748_v22 = vshrl.u32 %v6560_v29, 16 }
 0x19b   : > { %714 = vrot.lane.b32.xlu1 %v6562_v30, %s6246_s20  ;;  %698 = vrot.lane.b32.xlu0 %v6562_v30, %s6247_s27  ;;  %v5588_v31 = vpop.f32.mrb[4].mxu0  ;;  %v6607_v51 = vpack.c.bf16 %v671_v48, %v668_v44  ;;  %v726_v11 = vshrl.u32 %v6562_v30, 16 }
 0x19c   : > { %v548_v32 = vadd.f32 %v5588_v31, %v5365_v21  ;;  %v539_v33 = vpop.f32.mrb[5].mxu0  ;;  %v6609_v52 = vpack.c.bf16 %v663_v50, %v660_v46 }
 0x19d   : > { %v540_v34 = vadd.f32 %v5365_v21, %v539_v33  ;;  %v5589_v35 = vpop.f32.mrb[6].mxu0 }
 0x19e   : > { %v551_v36 = vadd.f32 %v5589_v35, %v5365_v21  ;;  %v542_v37 = vpop.f32.mrb[7].mxu0  ;;  %v6623_v59 = vpop.f32.mrb[4].mxu1 }
 0x19f   : > { %700 = vrot.lane.b32.xlu1 %v6560_v29, %s6247_s27  ;;  %706 = vrot.lane.b32.xlu0 %v6562_v30, %s6248_s26  ;;  %v543_v38 = vadd.f32 %v5365_v21, %v542_v37  ;;  %v6625_v63 = vpop.f32.mrb[5].mxu1 }
 0x1a0   : > { %v6572_v39 = vpack.c.bf16 %v551_v36, %v548_v32  ;;  %v6632_v6 = vpop.f32.mrb[6].mxu1 }
 0x1a1   : > { %v6574_v40 = vpack.c.bf16 %v543_v38, %v540_v34  ;;  %v6634_v9 = vpop.f32.mrb[7].mxu1 }
 0x1a2   : > { %v780_v2 = vshrl.u32 %v6572_v39, 16 }
 0x1a3   : > { %716 = vrot.lane.b32.xlu1 %v6560_v29, %s6246_s20  ;;  %708 = vrot.lane.b32.xlu0 %v6560_v29, %s6248_s26 }
 0x1a7   : > { %710 = vrot.lane.b32.xlu1 %v6574_v40, %s6248_s26  ;;  %702 = vrot.lane.b32.xlu0 %v6574_v40, %s6247_s27 }
 0x1ab   : > { %704 = vrot.lane.b32.xlu1 %v6572_v39, %s6247_s27  ;;  %718 = vrot.lane.b32.xlu0 %v6574_v40, %s6246_s20 }
 0x1af   : > { %720 = vrot.lane.b32.xlu1 %v6572_v39, %s6246_s20  ;;  %712 = vrot.lane.b32.xlu0 %v6572_v39, %s6248_s26 }
 0x1b3   : > { %1776 = vrot.lane.b32.xlu1 %v6609_v52, %s6247_s27  ;;  %1784 = vrot.lane.b32.xlu0 %v6609_v52, %s6248_s26 }
 0x1b7   : > { %1792 = vrot.lane.b32.xlu1 %v6609_v52, %s6246_s20  ;;  %1778 = vrot.lane.b32.xlu0 %v6607_v51, %s6247_s27 }
 0x1bb   : > { %1786 = vrot.lane.b32.xlu1 %v6607_v51, %s6248_s26 }
 0x1bf   : > { %1794 = vrot.lane.b32.xlu1 %v6607_v51, %s6246_s20 }
 0x20d   : > { %v715_v53 = vpop.permute.xlu1 %714  ;;  %v699_v54 = vpop.permute.xlu0 %698 }
 0x20e   : > { %v724_v3 = vpack.i.b16 %v699_v54, %v6562_v30  ;;  %v727_v7 = vshrl.u32 %v699_v54, 16  ;;  %v735_v10 = vshrl.u32 %v715_v53, 16 }
 0x210   : > { %v792_v14 = vcombine.high %v724_v3, %v6629_v1  ;;  %v728_v16 = vpack.i.b16 %v727_v7, %v726_v11  ;;  %v799_v24 = vrot.slane %v724_v3, %v6638_v13 }
 0x211   : > { %v707_v58 = vpop.permute.xlu0 %706  ;;  %v701_v61 = vpop.permute.xlu1 %700 }
 0x212   : > { %v732_v62 = vpack.i.b16 %v715_v53, %v707_v58  ;;  %v734_v8 = vshrl.u32 %v707_v58, 16  ;;  %v749_v17 = vshrl.u32 %v701_v61, 16  ;;  %v806_v25 = vrot.slane %v792_v14, %v6638_v13 }
 0x213   : > { %v858_v28 = vcombine.high %v728_v16, %v6629_v1  ;;  %v746_v30 = vpack.i.b16 %v701_v61, %v6560_v29  ;;  %v865_v44 = vrot.slane %v728_v16, %v6638_v13 }
 0x214   : > { %v807_v12 = vcombine.high %v732_v62, %v6629_v1  ;;  %v736_v18 = vpack.i.b16 %v735_v10, %v734_v8  ;;  %v814_v21 = vrot.slane %v732_v62, %v6638_v13  ;;  %v750_v31 = vpack.i.b16 %v749_v17, %v748_v22 }
 0x215   : > { %v717_v19 = vpop.permute.xlu1 %716  ;;  %v709_v20 = vpop.permute.xlu0 %708  ;;  %v872_v47 = vrot.slane %v858_v28, %v6638_v13  ;;  %v924_v29 = vcombine.high %v746_v30, %v6629_v1  ;;  %v764_v62 = vshrl.u32 %v6574_v40, 16  ;;  %v931_v3 = vrot.slane %v746_v30, %v6638_v13 }
 0x216   : > { %v821_v23 = vrot.slane %v807_v12, %v6638_v13  ;;  %v754_v27 = vpack.i.b16 %v717_v19, %v709_v20  ;;  %v873_v32 = vcombine.high %v736_v18, %v6629_v1  ;;  %v822_v33 = vcombine.low %v799_v24, %v814_v21 }
 0x217   : > { %v880_v34 = vrot.slane %v736_v18, %v6638_v13  ;;  %v757_v35 = vshrl.u32 %v717_v19, 16  ;;  %v756_v36 = vshrl.u32 %v709_v20, 16  ;;  %v823_v37 = vcombine.high %v799_v24, %v814_v21 }
 0x218   : > { %v838_v38 = vcombine.low %v806_v25, %v821_v23  ;;  %v839_v42 = vcombine.high %v806_v25, %v821_v23  ;;  %v939_v45 = vcombine.high %v754_v27, %v6629_v1  ;;  %v887_v48 = vrot.slane %v873_v32, %v6638_v13 }
 0x219   : > { %v703_v46 = vpop.permute.xlu0 %702  ;;  %v990_v49 = vcombine.high %v750_v31, %v6629_v1  ;;  %v830_v50 = vrot.slane %v822_v33, %v6646_v26  ;;  %v888_v53 = vcombine.low %v865_v44, %v880_v34  ;;  %v758_v54 = vpack.i.b16 %v757_v35, %v756_v36  ;;  %v711_v19 = vpop.permute.xlu1 %710 }
 0x21a   : > { %v837_v55 = vrot.slane %v823_v37, %v6646_v26  ;;  %v6661_v56 = vrot.slane %v838_v38, %v6646_v26  ;;  %v6664_v57 = vrot.slane %v839_v42, %v6646_v26  ;;  %v889_v58 = vcombine.high %v865_v44, %v880_v34 }
 0x21b   : > { %v946_v60 = vrot.slane %v754_v27, %v6638_v13  ;;  %v953_v61 = vrot.slane %v939_v45, %v6638_v13  ;;  %v938_v4 = vrot.slane %v924_v29, %v6638_v13  ;;  %v997_v5 = vrot.slane %v750_v31, %v6638_v13 }
 0x21c   : > { %v904_v7 = vcombine.low %v872_v47, %v887_v48  ;;  %v1004_v8 = vrot.slane %v990_v49, %v6638_v13  ;;  %v6675_v10 = vrot.slane %v888_v53, %v6646_v26  ;;  %v905_v11 = vcombine.high %v872_v47, %v887_v48 }
 0x21d   : > { %v1005_v12 = vcombine.high %v758_v54, %v6629_v1  ;;  %v719_v14 = vpop.permute.xlu0 %718  ;;  %v6679_v15 = vrot.slane %v889_v58, %v6646_v26  ;;  %v1320_v16 = vcombine.low %v830_v50, %v837_v55  ;;  %v5387_v17 = vcombine.high %v830_v50, %v837_v55  ;;  %v705_v49 = vpop.permute.xlu1 %704 }
 0x21e   : > { %v1336_v18 = vcombine.low %v6661_v56, %v6664_v57  ;;  %v5388_v20 = vcombine.high %v6661_v56, %v6664_v57  ;;  %v954_v21 = vcombine.low %v931_v3, %v946_v60  ;;  %v955_v22 = vcombine.high %v931_v3, %v946_v60 }
 0x21f   : > { %v970_v23 = vcombine.low %v938_v4, %v953_v61  ;;  %v6686_v24 = vrot.slane %v904_v7, %v6646_v26  ;;  %v971_v25 = vcombine.high %v938_v4, %v953_v61  ;;  %v1012_v27 = vrot.slane %v758_v54, %v6638_v13 }
 0x220   : > { %v770_v28 = vpack.i.b16 %v719_v14, %v711_v19  ;;  %v6690_v30 = vrot.slane %v905_v11, %v6646_v26  ;;  %v1019_v31 = vrot.slane %v1005_v12, %v6638_v13  ;;  %v772_v32 = vshrl.u32 %v711_v19, 16 }
 0x221   : > { %v773_v33 = vshrl.u32 %v719_v14, 16  ;;  %v1370_v34 = vcombine.low %v6675_v10, %v6679_v15  ;;  %v5389_v35 = vcombine.high %v6675_v10, %v6679_v15  ;;  %v762_v36 = vpack.i.b16 %v703_v46, %v6574_v40 }
 0x222   : > { %v765_v37 = vshrl.u32 %v703_v46, 16  ;;  %v6699_v38 = vrot.slane %v1320_v16, %v6638_v13  ;;  %v962_v42 = vrot.slane %v954_v21, %v6646_v26  ;;  %v969_v44 = vrot.slane %v955_v22, %v6646_v26 }
 0x223   : > { %v6704_v45 = vrot.slane %v970_v23, %v6646_v26  ;;  %v6707_v47 = vrot.slane %v971_v25, %v6646_v26  ;;  %v1020_v29 = vcombine.low %v997_v5, %v1012_v27  ;;  %v1021_v48 = vcombine.high %v997_v5, %v1012_v27 }
 0x224   : > { %v1071_v50 = vcombine.high %v770_v28, %v6629_v1  ;;  %v6711_v40 = vrot.slane %v5387_v17, %v6638_v13  ;;  %v1036_v46 = vcombine.low %v1004_v8, %v1019_v31  ;;  %v1037_v53 = vcombine.high %v1004_v8, %v1019_v31 }
 0x225   : > { %v774_v54 = vpack.i.b16 %v773_v33, %v772_v32  ;;  %v1386_v55 = vcombine.low %v6686_v24, %v6690_v30  ;;  %v5390_v58 = vcombine.high %v6686_v24, %v6690_v30  ;;  %v766_v60 = vpack.i.b16 %v765_v37, %v764_v62  ;;  %v721_v33 = vpop.permute.xlu1 %720 }
 0x226   : > { %v1056_v61 = vcombine.high %v762_v36, %v6629_v1  ;;  %v1420_v3 = vcombine.low %v962_v42, %v969_v44  ;;  %v5391_v4 = vcombine.high %v962_v42, %v969_v44  ;;  %v781_v5 = vshrl.u32 %v705_v49, 16 }
 0x227   : > { %v1078_v7 = vrot.slane %v770_v28, %v6638_v13  ;;  %v6720_v11 = vrot.slane %v1020_v29, %v6646_v26  ;;  %v6723_v8 = vrot.slane %v1021_v48, %v6646_v26  ;;  %v1436_v12 = vcombine.low %v6704_v45, %v6707_v47  ;;  %v713_v29 = vpop.permute.xlu0 %712 }
 0x228   : > { %v1085_v14 = vrot.slane %v1071_v50, %v6638_v13  ;;  %v6729_v62 = vrot.slane %v1036_v46, %v6646_v26  ;;  %v6732_v16 = vrot.slane %v1037_v53, %v6646_v26  ;;  %v1063_v17 = vrot.slane %v762_v36, %v6638_v13 }
 0x229   : > { %v1137_v19 = vcombine.high %v774_v54, %v6629_v1  ;;  %v5392_v21 = vcombine.high %v6704_v45, %v6707_v47  ;;  %v1070_v22 = vrot.slane %v1056_v61, %v6638_v13  ;;  %v1122_v23 = vcombine.high %v766_v60, %v6629_v1 }
 0x22a   : > { %v778_v25 = vpack.i.b16 %v705_v49, %v6572_v39  ;;  %v6742_v27 = vrot.slane %v1420_v3, %v6638_v13  ;;  %v782_v28 = vpack.i.b16 %v781_v5, %v780_v2  ;;  %v1086_v31 = vcombine.low %v1063_v17, %v1078_v7 }
 0x22b   : > { %v1087_v32 = vcombine.high %v1063_v17, %v1078_v7  ;;  %v6747_v36 = vrot.slane %v5391_v4, %v6638_v13  ;;  %v1102_v37 = vcombine.low %v1070_v22, %v1085_v14  ;;  %v1103_v42 = vcombine.high %v1070_v22, %v1085_v14 }
 0x22c   : > { %v1144_v44 = vrot.slane %v774_v54, %v6638_v13  ;;  %v1470_v48 = vcombine.low %v6720_v11, %v6723_v8  ;;  %v5393_v49 = vcombine.high %v6720_v11, %v6723_v8  ;;  %v1486_v39 = vcombine.low %v6729_v62, %v6732_v16 }
 0x22d   : > { %v1151_v2 = vrot.slane %v1137_v19, %v6638_v13  ;;  %v1129_v50 = vrot.slane %v766_v60, %v6638_v13  ;;  %v1136_v46 = vrot.slane %v1122_v23, %v6638_v13  ;;  %v1188_v53 = vcombine.high %v778_v25, %v6629_v1 }
 0x22e   : > { %v789_v61 = vshrl.u32 %v721_v33, 16  ;;  %v1254_v54 = vcombine.high %v782_v28, %v6629_v1  ;;  %v6762_v3 = vrot.slane %v1086_v31, %v6646_v26  ;;  %v6765_v4 = vrot.slane %v1087_v32, %v6646_v26 }
 0x22f   : > { %v788_v5 = vshrl.u32 %v713_v29, 16  ;;  %v6768_v7 = vrot.slane %v1102_v37, %v6646_v26  ;;  %v6771_v11 = vrot.slane %v1103_v42, %v6646_v26  ;;  %v1152_v60 = vcombine.low %v1129_v50, %v1144_v44 }
 0x230   : > { %v1153_v8 = vcombine.high %v1129_v50, %v1144_v44  ;;  %v5394_v14 = vcombine.high %v6729_v62, %v6732_v16  ;;  %v1168_v17 = vcombine.low %v1136_v46, %v1151_v2  ;;  %v1343_v19 = vrot.slane %v1336_v18, %v6638_v13 }
 0x231   : > { %v1351_v22 = vrot.slane %v5388_v20, %v6638_v13  ;;  %v6784_v23 = vrot.slane %v778_v25, %v6638_v13  ;;  %v6787_v31 = vrot.slane %v1188_v53, %v6638_v13  ;;  %v6790_v32 = vrot.slane %v782_v28, %v6638_v13 }
 0x232   : > { %v786_v62 = vpack.i.b16 %v721_v33, %v713_v29  ;;  %v6793_v16 = vrot.slane %v1254_v54, %v6638_v13  ;;  %v1169_v37 = vcombine.high %v1136_v46, %v1151_v2  ;;  %v1520_v18 = vcombine.low %v6762_v3, %v6765_v4 }
 0x233   : > { %v790_v42 = vpack.i.b16 %v789_v61, %v788_v5  ;;  %v1160_v56 = vrot.slane %v1152_v60, %v6646_v26  ;;  %v1167_v57 = vrot.slane %v1153_v8, %v6646_v26  ;;  %v5395_v20 = vcombine.high %v6762_v3, %v6765_v4 }
 0x234   : > { %v1536_v25 = vcombine.low %v6768_v7, %v6771_v11  ;;  %v1176_v28 = vrot.slane %v1168_v17, %v6646_v26  ;;  %v5396_v33 = vcombine.high %v6768_v7, %v6771_v11  ;;  %v1352_v44 = vcombine.low %v6699_v38, %v6711_v40 }
 0x235   : > { %v1360_v29 = vcombine.low %v1343_v19, %v1351_v22  ;;  %v1377_v2 = vrot.slane %v1370_v34, %v6638_v13  ;;  %v1385_v50 = vrot.slane %v5389_v35, %v6638_v13  ;;  %v1393_v46 = vrot.slane %v1386_v55, %v6638_v13 }
 0x236   : > { %v1401_v38 = vrot.slane %v5390_v58, %v6638_v13  ;;  %v1183_v40 = vrot.slane %v1169_v37, %v6646_v26  ;;  %v6826_v53 = vrot.slane %v1520_v18, %v6638_v13  ;;  %v1443_v10 = vrot.slane %v1436_v12, %v6638_v13 }
 0x237   : > { %v1451_v15 = vrot.slane %v5392_v21, %v6638_v13  ;;  %v6834_v34 = vrot.slane %v1360_v29, %v6646_v26  ;;  %v1402_v35 = vcombine.low %v1377_v2, %v1385_v50  ;;  %v1477_v24 = vrot.slane %v1470_v48, %v6638_v13 }
 0x238   : > { %v1410_v55 = vcombine.low %v1393_v46, %v1401_v38  ;;  %v6838_v30 = vrot.slane %v1352_v44, %v6646_v26  ;;  %v1485_v61 = vrot.slane %v5393_v49, %v6638_v13  ;;  %v1493_v54 = vrot.slane %v1486_v39, %v6638_v13 }
 0x239   : > { %v1460_v58 = vcombine.low %v1443_v10, %v1451_v15  ;;  %v1409_v45 = vrot.slane %v1402_v35, %v6646_v26  ;;  %v1452_v12 = vcombine.low %v6742_v27, %v6747_v36  ;;  %v1501_v21 = vrot.slane %v5394_v14, %v6638_v13 }
 0x23a   : > { %v1417_v47 = vrot.slane %v1410_v55, %v6646_v26  ;;  %v1203_v3 = vcombine.high %v786_v62, %v6629_v1  ;;  %v1210_v48 = vrot.slane %v786_v62, %v6638_v13  ;;  %v1269_v4 = vcombine.high %v790_v42, %v6629_v1 }
 0x23b   : > { %v1502_v5 = vcombine.low %v1477_v24, %v1485_v61  ;;  %v1368_v49 = vcombine.low %v6838_v30, %v6834_v34  ;;  %v1467_v7 = vrot.slane %v1460_v58, %v6646_v26  ;;  %v1510_v11 = vcombine.low %v1493_v54, %v1501_v21 }
 0x23c   : > { %v1418_v39 = vcombine.low %v1409_v45, %v1417_v47  ;;  %v1570_v60 = vcombine.low %v1160_v56, %v1167_v57  ;;  %v5397_v8 = vcombine.high %v1160_v56, %v1167_v57  ;;  %v1586_v17 = vcombine.low %v1176_v28, %v1183_v40 }
 0x23d   : > { %v5398_v27 = vcombine.high %v1176_v28, %v1183_v40  ;;  %v1459_v14 = vrot.slane %v1452_v12, %v6646_v26  ;;  %v1509_v19 = vrot.slane %v1502_v5, %v6646_v26  ;;  %v1517_v22 = vrot.slane %v1510_v11, %v6646_v26 }
 0x23e   : > { %v1722_v36 = vpack.i.b16 %v1418_v39, %v1368_v49  ;;  %v1217_v62 = vrot.slane %v1203_v3, %v6638_v13  ;;  %v1218_v37 = vcombine.low %v6784_v23, %v1210_v48  ;;  %v1276_v18 = vrot.slane %v790_v42, %v6638_v13 }
 0x23f   : > { %v1283_v44 = vrot.slane %v1269_v4, %v6638_v13  ;;  %v6861_v56 = vcombine.low %v1459_v14, %v1467_v7  ;;  %v6863_v57 = vcombine.low %v1509_v19, %v1517_v22  ;;  %v1724_v28 = vshrl.u32 %v1418_v39, 16 }
 0x240   : > { %v2865_v29 = vsel %vm2860_vm1, %v1722_v36, 0  ;;  %v1723_v2 = vshrl.u32 %v1368_v49, 16  ;;  %v1543_v50 = vrot.slane %v1536_v25, %v6638_v13  ;;  %v1551_v46 = vrot.slane %v5396_v33, %v6638_v13 }
 0x241   : > { %5615 = vmatpush3.bf16.xpose.msra.mxu1 %v2865_v29  ;;  %v1593_v38 = vrot.slane %v1586_v17, %v6638_v13  ;;  %v1734_v42 = vpack.i.b16 %v6863_v57, %v6861_v56  ;;  %v1577_v40 = vrot.slane %v1570_v60, %v6638_v13  ;;  %v1585_v10 = vrot.slane %v5397_v8, %v6638_v13 }
 0x242   : > { %5620 = vmatprep.subr.bf16.mxu1 %v6249_v41  ;;  %v1601_v15 = vrot.slane %v5398_v27, %v6638_v13  ;;  %v1535_v35 = vrot.slane %v5395_v20, %v6638_v13  ;;  %v1219_v55 = vcombine.high %v6784_v23, %v1210_v48  ;;  %v1300_v25 = vcombine.low %v6793_v16, %v1283_v44  ;;  %v6887_v23 = vld [vmem:[#allocation2] sm:$0xf] }
 0x243   : > { %v1301_v33 = vcombine.high %v6793_v16, %v1283_v44  ;;  %v3046_v24 = vsel %vm2860_vm1, %v1734_v42, 0  ;;  %v1725_v58 = vpack.i.b16 %v1724_v28, %v1723_v2  ;;  %v6879_v61 = vcombine.high %v1509_v19, %v1517_v22 }
 0x244   : > { %v1610_v54 = vcombine.low %v1593_v38, %v1601_v15  ;;  %v6882_v12 = vrot.slane %v1218_v37, %v6646_v26  ;;  %v1234_v21 = vcombine.low %v6787_v31, %v1217_v62  ;;  %v1235_v3 = vcombine.high %v6787_v31, %v1217_v62  ;;  %5639 = vmatpush3.bf16.xpose.msra.mxu0 %v3046_v24 }
 0x245   : > { %v1284_v20 = vcombine.low %v6790_v32, %v1276_v18  ;;  %v1285_v16 = vcombine.high %v6790_v32, %v1276_v18  ;;  %5650 = vmatprep.subr.bf16.mxu0 %v6249_v41  ;;  %v6891_v48 = vcombine.high %v1459_v14, %v1467_v7  ;;  %v1560_v4 = vcombine.low %v1543_v50, %v1551_v46  ;;  %v6925_v50 = vld [vmem:[#allocation2 + $0x4] sm:$0xf] }
 0x246   : > { %v1602_v5 = vcombine.low %v1577_v40, %v1585_v10  ;;  %v1233_v49 = vrot.slane %v1219_v55, %v6646_v26  ;;  %v1308_v39 = vrot.slane %v1300_v25, %v6646_v26  ;;  %v1315_v11 = vrot.slane %v1301_v33, %v6646_v26  ;;  %v6946_v33 = vld [vmem:[#allocation2 + $0x8] sm:$0xf] }
 0x247   : > { %v1419_v31 = vcombine.high %v1409_v45, %v1417_v47  ;;  %v2911_v60 = vsel %vm2860_vm1, %v1725_v58, 0  ;;  %v1740_v32 = vpack.i.b16 %v6879_v61, %v6891_v48  ;;  %v1552_v7 = vcombine.low %v6826_v53, %v1535_v35 }
 0x248   : > { %5617 = vmatmul.mubr.msk.bf16.vlgmr.msra.gmra.mrb[8].mxu1 %vm2860_vm1, %v6887_v23  ;;  %v1617_v8 = vrot.slane %v1610_v54, %v6646_v26  ;;  %v1242_v17 = vrot.slane %v1234_v21, %v6646_v26  ;;  %v1249_v27 = vrot.slane %v1235_v3, %v6646_v26  ;;  %v1369_v45 = vcombine.high %v6838_v30, %v6834_v34 }
 0x249   : > { %5621 = vmatpush3.bf16.xpose.msra.mxu1 %v2911_v60  ;;  %5622 = vmatprep.mubr.msk.bf16.mxu1 %vm6250_vm0, %v6249_v41  ;;  %v1292_v47 = vrot.slane %v1284_v20, %v6646_v26  ;;  %v1299_v36 = vrot.slane %v1285_v16, %v6646_v26  ;;  %v1567_v53 = vrot.slane %v1560_v4, %v6646_v26  ;;  %v3132_v34 = vsel %vm2860_vm1, %v1740_v32, 0 }
 0x24a   : > { %5626 = vmatprep.subr.bf16.mxu1 %v6249_v41  ;;  %v1609_v14 = vrot.slane %v1602_v5, %v6646_v26  ;;  %v1686_v19 = vcombine.low %v1308_v39, %v1315_v11  ;;  %v1728_v22 = vpack.i.b16 %v1419_v31, %v1369_v45  ;;  %v684_v62 = vadd.f32 %v6623_v59, %v6601_v43 }
 0x24b   : > { %v676_v37 = vadd.f32 %v6601_v43, %v6625_v63  ;;  %v5402_v18 = vcombine.high %v1308_v39, %v1315_v11  ;;  %5641 = vmatmul.mubr.msk.bf16.vlgmr.msra.gmra.mrb[8].mxu0 %vm2860_vm1, %v6887_v23  ;;  %v1559_v30 = vrot.slane %v1552_v7, %v6646_v26  ;;  %v1620_v29 = vcombine.low %v6882_v12, %v1233_v49 }
 0x24c   : > { %v6922_v44 = vcombine.low %v1609_v14, %v1617_v8  ;;  %v1636_v28 = vcombine.low %v1242_v17, %v1249_v27  ;;  %v5400_v2 = vcombine.high %v1242_v17, %v1249_v27  ;;  %5651 = vmatpush3.bf16.xpose.msra.mxu0 %v3132_v34  ;;  %5652 = vmatprep.mubr.msk.bf16.mxu0 %vm6250_vm0, %v6249_v41  ;;  %v2957_v40 = vsel %vm2860_vm1, %v1728_v22, 0 }
 0x24d   : > { %v1670_v59 = vcombine.low %v1292_v47, %v1299_v36  ;;  %v5401_v63 = vcombine.high %v1292_v47, %v1299_v36  ;;  %5662 = vmatprep.subr.bf16.mxu0 %v6249_v41  ;;  %v6930_v46 = vcombine.low %v1559_v30, %v1567_v53  ;;  %v687_v38 = vadd.f32 %v6632_v6, %v6601_v43 }
 0x24e   : > { %v5399_v42 = vcombine.high %v6882_v12, %v1233_v49  ;;  %v1730_v10 = vshrl.u32 %v1419_v31, 16  ;;  %v1693_v15 = vrot.slane %v1686_v19, %v6638_v13  ;;  %v1701_v55 = vrot.slane %v5402_v18, %v6638_v13 }
 0x24f   : > { %v1746_v35 = vpack.i.b16 %v6922_v44, %v6930_v46  ;;  %v6942_v25 = vpack.c.bf16 %v687_v38, %v684_v62  ;;  %v679_v6 = vadd.f32 %v6601_v43, %v6634_v9  ;;  %v1729_v24 = vshrl.u32 %v1369_v45, 16 }
 0x250   : > { %5623 = vmatmul.mubr.msk.bf16.vlgmr.msra.gmra.mrb[12].mxu1 %vm2860_vm1, %v6925_v50  ;;  %v1643_v58 = vrot.slane %v1636_v28, %v6638_v13  ;;  %v1651_v54 = vrot.slane %v5400_v2, %v6638_v13  ;;  %v1677_v12 = vrot.slane %v1670_v59, %v6638_v13  ;;  %v1685_v21 = vrot.slane %v5401_v63, %v6638_v13  ;;  %v1777_v59 = vpop.permute.xlu1 %1776 }
 0x251   : > { %5627 = vmatpush3.bf16.xpose.msra.mxu1 %v2957_v40  ;;  %5628 = vmatprep.mubr.msk.bf16.mxu1 %vm6250_vm0, %v6249_v41  ;;  %v6955_v3 = vpack.c.bf16 %v679_v6, %v676_v37  ;;  %v1627_v43 = vrot.slane %v1620_v29, %v6638_v13  ;;  %v1635_v9 = vrot.slane %v5399_v42, %v6638_v13  ;;  %v3218_v20 = vsel %vm2860_vm1, %v1746_v35, 0  ;;  %v1785_v40 = vpop.permute.xlu0 %1784 }
 0x252   : > { %5632 = vmatprep.subr.bf16.mxu1 %v6249_v41  ;;  %v1731_v16 = vpack.i.b16 %v1730_v10, %v1729_v24  ;;  %v6962_v4 = vcombine.high %v1609_v14, %v1617_v8  ;;  %v1710_v5 = vcombine.low %v1693_v15, %v1701_v55  ;;  %v6969_v49 = vcombine.high %v1559_v30, %v1567_v53  ;;  %v6990_v14 = vld [vmem:[#allocation2 + $0xc] sm:$0xf] }
 0x253   : > { %5653 = vmatmul.mubr.msk.bf16.vlgmr.msra.gmra.mrb[12].mxu0 %vm2860_vm1, %v6946_v33  ;;  %1780 = vrot.lane.b32.xlu1 %v6955_v3, %s6247_s27  ;;  %v1660_v39 = vcombine.low %v1643_v58, %v1651_v54  ;;  %v1702_v11 = vcombine.low %v1677_v12, %v1685_v21  ;;  %v1736_v31 = vshrl.u32 %v6863_v57, 16  ;;  %v1652_v7 = vcombine.low %v1627_v43, %v1635_v9 }
 0x254   : > { %5663 = vmatpush3.bf16.xpose.msra.mxu0 %v3218_v20  ;;  %5664 = vmatprep.mubr.msk.bf16.mxu0 %vm6250_vm0, %v6249_v41  ;;  %v3003_v60 = vsel %vm2860_vm1, %v1731_v16, 0  ;;  %v1752_v32 = vpack.i.b16 %v6962_v4, %v6969_v49  ;;  %v1717_v8 = vrot.slane %v1710_v5, %v6646_v26  ;;  %v1735_v17 = vshrl.u32 %v6861_v56, 16  ;;  %v1793_v6 = vpop.permute.xlu1 %1792 }
 0x255   : > { %5674 = vmatprep.subr.bf16.mxu0 %v6249_v41  ;;  %v1667_v57 = vrot.slane %v1660_v39, %v6646_v26  ;;  %v1709_v27 = vrot.slane %v1702_v11, %v6646_v26  ;;  %v1659_v36 = vrot.slane %v1652_v7, %v6646_v26  ;;  %v1742_v62 = vshrl.u32 %v6879_v61, 16 }
 0x256   : > { %v3304_v45 = vsel %vm2860_vm1, %v1752_v32, 0  ;;  %v1737_v47 = vpack.i.b16 %v1736_v31, %v1735_v17  ;;  %v1741_v37 = vshrl.u32 %v6891_v48, 16  ;;  %v1748_v28 = vshrl.u32 %v6922_v44, 16 }
 0x257   : > { %v6988_v53 = vcombine.low %v1709_v27, %v1717_v8  ;;  %v6995_v56 = vcombine.low %v1659_v36, %v1667_v57  ;;  %v7010_v30 = vcombine.high %v1709_v27, %v1717_v8  ;;  %v7015_v61 = vcombine.high %v1659_v36, %v1667_v57 }
 0x258   : > { %5629 = vmatmul.mubr.msk.bf16.vlgmr.msra.gmra.mrb[16].mxu1 %vm2860_vm1, %v6946_v33  ;;  %v3089_v19 = vsel %vm2860_vm1, %v1737_v47, 0  ;;  %v1743_v34 = vpack.i.b16 %v1742_v62, %v1741_v37  ;;  %v1804_v2 = vshrl.u32 %v6609_v52, 16  ;;  %v1747_v63 = vshrl.u32 %v6930_v46, 16 }
 0x259   : > { %5633 = vmatpush3.bf16.xpose.msra.mxu1 %v3003_v60  ;;  %5634 = vmatprep.mubr.msk.bf16.mxu1 %vm6250_vm0, %v6249_v41  ;;  %v1758_v22 = vpack.i.b16 %v6988_v53, %v6995_v56  ;;  %v1764_v29 = vpack.i.b16 %v7010_v30, %v7015_v61  ;;  %v1802_v38 = vpack.i.b16 %v1777_v59, %v6609_v52  ;;  %v1805_v42 = vshrl.u32 %v1777_v59, 16 }
 0x25a   : > { %5644 = vmatprep.subr.bf16.mxu1 %v6249_v41  ;;  %v3175_v48 = vsel %vm2860_vm1, %v1743_v34, 0  ;;  %v1749_v10 = vpack.i.b16 %v1748_v28, %v1747_v63  ;;  %v1812_v35 = vshrl.u32 %v1785_v40, 16  ;;  %v1813_v52 = vshrl.u32 %v1793_v6, 16 }
 0x25b   : > { %5665 = vmatmul.mubr.msk.bf16.vlgmr.msra.gmra.mrb[16].mxu0 %vm2860_vm1, %v6887_v23  ;;  %v3390_v18 = vsel %vm2860_vm1, %v1758_v22, 0  ;;  %v3476_v44 = vsel %vm2860_vm1, %v1764_v29, 0  ;;  %v1806_v15 = vpack.i.b16 %v1805_v42, %v1804_v2  ;;  %v1864_v55 = vcombine.high %v1802_v38, %v6629_v1 }
 0x25c   : > { %5675 = vmatpush3.bf16.xpose.msra.mxu0 %v3304_v45  ;;  %5676 = vmatprep.mubr.msk.bf16.mxu0 %vm6250_vm0, %v6249_v41  ;;  %v1871_v24 = vrot.slane %v1802_v38, %v6638_v13  ;;  %v3261_v58 = vsel %vm2860_vm1, %v1749_v10, 0  ;;  %v1754_v54 = vshrl.u32 %v6962_v4, 16  ;;  %v1814_v12 = vpack.i.b16 %v1813_v52, %v1812_v35 }
 0x25d   : > { %5686 = vmatprep.subr.bf16.mxu0 %v6249_v41  ;;  %v1930_v46 = vcombine.high %v1806_v15, %v6629_v1  ;;  %v1753_v21 = vshrl.u32 %v6969_v49, 16  ;;  %v1878_v43 = vrot.slane %v1864_v55, %v6638_v13  ;;  %v1937_v16 = vrot.slane %v1806_v15, %v6638_v13 }
 0x25e   : > { %v1945_v4 = vcombine.high %v1814_v12, %v6629_v1  ;;  %v1952_v39 = vrot.slane %v1814_v12, %v6638_v13  ;;  %v1759_v34 = vshrl.u32 %v6995_v56, 16  ;;  %v1766_v52 = vshrl.u32 %v7010_v30, 16 }
 0x25f   : > { %v1944_v5 = vrot.slane %v1930_v46, %v6638_v13  ;;  %v1755_v60 = vpack.i.b16 %v1754_v54, %v1753_v21 }
 0x260   : > { %5635 = vmatmul.mubr.msk.bf16.vlgmr.msra.gmra.mrb[20].mxu1 %vm2860_vm1, %v6990_v14  ;;  %v1959_v32 = vrot.slane %v1945_v4, %v6638_v13  ;;  %v1960_v27 = vcombine.low %v1937_v16, %v1952_v39  ;;  %v1961_v45 = vcombine.high %v1937_v16, %v1952_v39 }
 0x261   : > { %5645 = vmatpush3.bf16.xpose.msra.mxu1 %v3089_v19  ;;  %5646 = vmatprep.mubr.msk.bf16.mxu1 %vm6250_vm0, %v6249_v41  ;;  %v3347_v37 = vsel %vm2860_vm1, %v1755_v60, 0 }
 0x262   : > { %5656 = vmatprep.subr.bf16.mxu1 %v6249_v41  ;;  %v1976_v47 = vcombine.low %v1944_v5, %v1959_v32  ;;  %v1977_v36 = vcombine.high %v1944_v5, %v1959_v32  ;;  %v1968_v29 = vrot.slane %v1960_v27, %v6646_v26  ;;  %v1975_v28 = vrot.slane %v1961_v45, %v6646_v26 }
 0x263   : > { %5677 = vmatmul.mubr.msk.bf16.vlgmr.msra.gmra.mrb[20].mxu0 %vm2860_vm1, %v6946_v33 }
 0x264   : > { %5687 = vmatpush3.bf16.xpose.msra.mxu0 %v3390_v18  ;;  %5688 = vmatprep.mubr.msk.bf16.mxu0 %vm6250_vm0, %v6249_v41  ;;  %v1760_v18 = vshrl.u32 %v6988_v53, 16  ;;  %v1984_v2 = vrot.slane %v1976_v47, %v6646_v26  ;;  %v1991_v63 = vrot.slane %v1977_v36, %v6646_v26  ;;  %v5405_v10 = vcombine.high %v1968_v29, %v1975_v28 }
 0x265   : > { %5698 = vmatprep.subr.bf16.mxu0 %v6249_v41 }
 0x266   : > { %v2458_v15 = vcombine.low %v1984_v2, %v1991_v63  ;;  %v5406_v35 = vcombine.high %v1984_v2, %v1991_v63 }
 0x268   : > { %5647 = vmatmul.mubr.msk.bf16.vlgmr.msra.gmra.mrb[24].mxu1 %vm2860_vm1, %v6925_v50  ;;  %v2465_v21 = vrot.slane %v2458_v15, %v6638_v13  ;;  %v2473_v30 = vrot.slane %v5406_v35, %v6638_v13 }
 0x269   : > { %5657 = vmatpush3.bf16.xpose.msra.mxu1 %v3175_v48  ;;  %5658 = vmatprep.mubr.msk.bf16.mxu1 %vm6250_vm0, %v6249_v41 }
 0x26a   : > { %5668 = vmatprep.subr.bf16.mxu1 %v6249_v41  ;;  %v2482_v16 = vcombine.low %v2465_v21, %v2473_v30 }
 0x26b   : > { %5689 = vmatmul.mubr.msk.bf16.vlgmr.msra.gmra.mrb[24].mxu0 %vm2860_vm1, %v6887_v23  ;;  %v1810_v23 = vpack.i.b16 %v1793_v6, %v1785_v40  ;;  %v1761_v40 = vpack.i.b16 %v1760_v18, %v1759_v34 }
 0x26c   : > { %5699 = vmatpush3.bf16.xpose.msra.mxu0 %v3476_v44  ;;  %5700 = vmatprep.mubr.msk.bf16.mxu0 %vm6250_vm0, %v6249_v41  ;;  %v2442_v44 = vcombine.low %v1968_v29, %v1975_v28  ;;  %v2489_v4 = vrot.slane %v2482_v16, %v6646_v26 }
 0x26d   : > { %5710 = vmatprep.subr.bf16.mxu0 %v6249_v41  ;;  %v1879_v9 = vcombine.high %v1810_v23, %v6629_v1  ;;  %v1886_v20 = vrot.slane %v1810_v23, %v6638_v13  ;;  %v3433_v46 = vsel %vm2860_vm1, %v1761_v40, 0 }
 0x26e   : > { %v2449_v23 = vrot.slane %v2442_v44, %v6638_v13 }
 0x26f   : > { %v1893_v11 = vrot.slane %v1879_v9, %v6638_v13  ;;  %v1894_v31 = vcombine.low %v1871_v24, %v1886_v20  ;;  %v1895_v49 = vcombine.high %v1871_v24, %v1886_v20  ;;  %v1765_v24 = vshrl.u32 %v7015_v61, 16 }
 0x270   : > { %5659 = vmatmul.mubr.msk.bf16.vlgmr.msra.gmra.mrb[28].mxu1 %vm2860_vm1, %v6990_v14 }
 0x271   : > { %5669 = vmatpush3.bf16.xpose.msra.mxu1 %v3261_v58  ;;  %5670 = vmatprep.mubr.msk.bf16.mxu1 %vm6250_vm0, %v6249_v41  ;;  %v1902_v7 = vrot.slane %v1894_v31, %v6646_v26  ;;  %v1909_v8 = vrot.slane %v1895_v49, %v6646_v26  ;;  %v1910_v17 = vcombine.low %v1878_v43, %v1893_v11 }
 0x272   : > { %5680 = vmatprep.subr.bf16.mxu1 %v6249_v41  ;;  %v1911_v57 = vcombine.high %v1878_v43, %v1893_v11  ;;  %v2457_v58 = vrot.slane %v5405_v10, %v6638_v13  ;;  %v1767_v43 = vpack.i.b16 %v1766_v52, %v1765_v24 }
 0x273   : > { %5701 = vmatmul.mubr.msk.bf16.vlgmr.msra.gmra.mrb[28].mxu0 %vm2860_vm1, %v6946_v33  ;;  %v1918_v19 = vrot.slane %v1910_v17, %v6646_v26  ;;  %v2392_v22 = vcombine.low %v1902_v7, %v1909_v8  ;;  %v5403_v62 = vcombine.high %v1902_v7, %v1909_v8 }
 0x274   : > { %5712 = vmatprep.mubr.msk.bf16.mxu0 %vm6250_vm0, %v6249_v41  ;;  %v1925_v33 = vrot.slane %v1911_v57, %v6646_v26  ;;  %v2474_v20 = vcombine.low %v2449_v23, %v2457_v58  ;;  %v3519_v61 = vsel %vm2860_vm1, %v1767_v43, 0 }
 0x275   : > { %v2399_v53 = vrot.slane %v2392_v22, %v6638_v13  ;;  %v2407_v38 = vrot.slane %v5403_v62, %v6638_v13 }
 0x276   : > { %v2408_v48 = vcombine.low %v1918_v19, %v1925_v33  ;;  %v5404_v59 = vcombine.high %v1918_v19, %v1925_v33  ;;  %v2481_v5 = vrot.slane %v2474_v20, %v6646_v26 }
 0x277   : > { %v2424_v55 = vcombine.low %v2399_v53, %v2407_v38 }
 0x278   : > { %5671 = vmatmul.mubr.msk.bf16.vlgmr.msra.gmra.mrb[32].mxu1 %vm2860_vm1, %v6925_v50  ;;  %v2415_v42 = vrot.slane %v2408_v48, %v6638_v13  ;;  %v2423_v56 = vrot.slane %v5404_v59, %v6638_v13  ;;  %v2490_v39 = vcombine.low %v2481_v5, %v2489_v4  ;;  %v7103_v49 = vcombine.high %v2481_v5, %v2489_v4 }
 0x279   : > { %5681 = vmatpush3.bf16.xpose.msra.mxu1 %v3347_v37  ;;  %5682 = vmatprep.mubr.msk.bf16.mxu1 %vm6250_vm0, %v6249_v41  ;;  %v2431_v54 = vrot.slane %v2424_v55, %v6646_v26 }
 0x27a   : > { %5692 = vmatprep.subr.bf16.mxu1 %v6249_v41  ;;  %v2432_v6 = vcombine.low %v2415_v42, %v2423_v56  ;;  %v2805_v8 = vshrl.u32 %v7103_v49, 16 }
 0x27c   : > { %v2439_v12 = vrot.slane %v2432_v6, %v6646_v26 }
 0x27e   : > { %v2440_v9 = vcombine.low %v2431_v54, %v2439_v12  ;;  %v7101_v31 = vcombine.high %v2431_v54, %v2439_v12 }
 0x280   : > { %5683 = vmatmul.mubr.msk.bf16.vlgmr.msra.gmra.mrb[36].mxu1 %vm2860_vm1, %v6990_v14  ;;  %v2796_v11 = vshrl.u32 %v2440_v9, 16  ;;  %v2794_v60 = vpack.i.b16 %v2490_v39, %v2440_v9  ;;  %v2802_v32 = vpack.i.b16 %v7103_v49, %v7101_v31  ;;  %v2804_v7 = vshrl.u32 %v7101_v31, 16 }
 0x281   : > { %5693 = vmatpush3.bf16.xpose.msra.mxu1 %v3433_v46  ;;  %5694 = vmatprep.mubr.msk.bf16.mxu1 %vm6250_vm0, %v6249_v41 }
 0x282   : > { %5704 = vmatprep.subr.bf16.mxu1 %v6249_v41  ;;  %5711 = vmatpush3.bf16.msra.mxu0 %v2794_v60  ;;  %v7112_v57 = vpack.i.b16 %v2805_v8, %v2804_v7 }
 0x283   : > { %5722 = vmatprep.subr.bf16.mxu0 %v6249_v41 }
 0x288   : > { %5695 = vmatmul.mubr.msk.bf16.vlgmr.msra.gmra.mrb[40].mxu1 %vm2860_vm1, %v6925_v50  ;;  %v2797_v50 = vshrl.u32 %v2490_v39, 16 }
 0x289   : > { %5705 = vmatpush3.bf16.xpose.msra.mxu1 %v3519_v61  ;;  %5706 = vmatprep.mubr.msk.bf16.mxu1 %vm6250_vm0, %v6249_v41 }
 0x28a   : > { %5716 = vmatprep.subr.bf16.mxu1 %v6249_v41  ;;  %v2798_v17 = vpack.i.b16 %v2797_v50, %v2796_v11 }
 0x290   : > { %5707 = vmatmul.mubr.msk.bf16.vlgmr.msra.gmra.mrb[44].mxu1 %vm2860_vm1, %v6990_v14 }
 0x291   : > { %5717 = vmatpush3.bf16.msra.mxu1 %v2798_v17  ;;  %5718 = vmatprep.mubr.msk.bf16.mxu1 %vm6250_vm0, %v6249_v41 }
 0x292   : > { %5728 = vmatprep.subr.bf16.mxu1 %v6249_v41 }
 0x31b   : > { %v7117_v27 = vpop.f32.mrb[8].mxu1 }
 0x31c   : > { %v3562_v45 = vsel %vm3561_vm2, %v7117_v27, -inf  ;;  %v5618_v47 = vpop.f32.mrb[9].mxu1 }
 0x31d   : > { %3563 = vmax.xlane.f32.xlu0 %v3562_v45  ;;  %v2904_v36 = vpop.f32.mrb[10].mxu1 }
 0x31e   : > { %v5619_v14 = vpop.f32.mrb[11].mxu1  ;;  %v7121_v19 = vpop.f32.mrb[8].mxu0 }
 0x31f   : > { %v3574_v33 = vsel %vm3561_vm2, %v7121_v19, -inf  ;;  %v5642_v22 = vpop.f32.mrb[9].mxu0 }
 0x320   : > { %3575 = vmax.xlane.f32.xlu1 %v3574_v33  ;;  %v3085_v62 = vpop.f32.mrb[10].mxu0 }
 0x321   : > { %v5643_v37 = vpop.f32.mrb[11].mxu0 }
 0x323   : > { %v7125_v18 = vpop.f32.mrb[12].mxu1 }
 0x324   : > { %v5624_v34 = vpop.f32.mrb[13].mxu1  ;;  %v3565_v42 = vsel %vm3561_vm2, %v7125_v18, -inf }
 0x325   : > { %v2950_v48 = vpop.f32.mrb[14].mxu1 }
 0x326   : > { %v5625_v29 = vpop.f32.mrb[15].mxu1  ;;  %v7127_v28 = vpop.f32.mrb[12].mxu0 }
 0x327   : > { %v3580_v2 = vsel %vm3561_vm2, %v7127_v28, -inf  ;;  %v5654_v59 = vpop.f32.mrb[13].mxu0 }
 0x328   : > { %3581 = vmax.xlane.f32.xlu1 %v3580_v2  ;;  %v3171_v63 = vpop.f32.mrb[14].mxu0 }
 0x329   : > { %v5655_v53 = vpop.f32.mrb[15].mxu0 }
 0x32b   : > { %v7131_v38 = vpop.f32.mrb[16].mxu1 }
 0x32c   : > { %v3568_v40 = vsel %vm3561_vm2, %v7131_v38, -inf  ;;  %v5630_v56 = vpop.f32.mrb[17].mxu1  ;;  %3566 = vmax.xlane.f32.xlu1 %v3565_v42 }
 0x32d   : > { %3569 = vmax.xlane.f32.xlu0 %v3568_v40  ;;  %v2996_v44 = vpop.f32.mrb[18].mxu1 }
 0x32e   : > { %v5631_v10 = vpop.f32.mrb[19].mxu1  ;;  %v7137_v15 = vpop.f32.mrb[16].mxu0 }
 0x32f   : > { %v3586_v35 = vsel %vm3561_vm2, %v7137_v15, -inf  ;;  %v5666_v55 = vpop.f32.mrb[17].mxu0 }
 0x330   : > { %3587 = vmax.xlane.f32.xlu1 %v3586_v35  ;;  %v3257_v6 = vpop.f32.mrb[18].mxu0 }
 0x331   : > { %v5667_v46 = vpop.f32.mrb[19].mxu0 }
 0x333   : > { %v7141_v52 = vpop.f32.mrb[20].mxu1 }
 0x334   : > { %v3571_v24 = vsel %vm3561_vm2, %v7141_v52, -inf  ;;  %v5636_v23 = vpop.f32.mrb[21].mxu1 }
 0x335   : > { %3572 = vmax.xlane.f32.xlu0 %v3571_v24  ;;  %v3042_v58 = vpop.f32.mrb[22].mxu1 }
 0x336   : > { %v5637_v54 = vpop.f32.mrb[23].mxu1  ;;  %v7145_v12 = vpop.f32.mrb[20].mxu0 }
 0x337   : > { %v3592_v21 = vsel %vm3561_vm2, %v7145_v12, -inf  ;;  %v5678_v30 = vpop.f32.mrb[21].mxu0 }
 0x338   : > { %3593 = vmax.xlane.f32.xlu1 %v3592_v21  ;;  %v3343_v43 = vpop.f32.mrb[22].mxu0  ;;  %v7185_v21 = vpop.permute.xlu1 %1786 }
 0x339   : > { %v5679_v9 = vpop.f32.mrb[23].mxu0  ;;  %v7189_v43 = vpop.permute.xlu0 %1778 }
 0x33b   : > { %v7149_v20 = vpop.f32.mrb[24].mxu1 }
 0x33c   : > { %v3577_v16 = vsel %vm3561_vm2, %v7149_v20, -inf  ;;  %v5648_v61 = vpop.f32.mrb[25].mxu1  ;;  %v7187_v30 = vpop.permute.xlu1 %1794 }
 0x33d   : > { %3578 = vmax.xlane.f32.xlu0 %v3577_v16  ;;  %v3128_v5 = vpop.f32.mrb[26].mxu1 }
 0x33e   : > { %v5649_v4 = vpop.f32.mrb[27].mxu1  ;;  %v7153_v39 = vpop.f32.mrb[24].mxu0 }
 0x33f   : > { %v3598_v11 = vsel %vm3561_vm2, %v7153_v39, -inf  ;;  %v5690_v60 = vpop.f32.mrb[25].mxu0 }
 0x340   : > { %3599 = vmax.xlane.f32.xlu1 %v3598_v11  ;;  %v3429_v50 = vpop.f32.mrb[26].mxu0  ;;  %v7191_v9 = vpop.permute.xlu1 %1780 }
 0x341   : > { %v5691_v7 = vpop.f32.mrb[27].mxu0 }
 0x343   : > { %v7157_v8 = vpop.f32.mrb[28].mxu1 }
 0x344   : > { %v3583_v17 = vsel %vm3561_vm2, %v7157_v8, -inf  ;;  %v5660_v45 = vpop.f32.mrb[29].mxu1 }
 0x345   : > { %3584 = vmax.xlane.f32.xlu0 %v3583_v17  ;;  %v3214_v47 = vpop.f32.mrb[30].mxu1 }
 0x346   : > { %v5661_v36 = vpop.f32.mrb[31].mxu1  ;;  %v7161_v14 = vpop.f32.mrb[28].mxu0 }
 0x347   : > { %v3604_v33 = vsel %vm3561_vm2, %v7161_v14, -inf  ;;  %v5702_v22 = vpop.f32.mrb[29].mxu0 }
 0x348   : > { %3605 = vmax.xlane.f32.xlu1 %v3604_v33  ;;  %v3515_v62 = vpop.f32.mrb[30].mxu0 }
 0x349   : > { %v5703_v37 = vpop.f32.mrb[31].mxu0 }
 0x34b   : > { %v7165_v34 = vpop.f32.mrb[32].mxu1 }
 0x34c   : > { %v3589_v48 = vsel %vm3561_vm2, %v7165_v34, -inf  ;;  %v5672_v29 = vpop.f32.mrb[33].mxu1 }
 0x34d   : > { %3590 = vmax.xlane.f32.xlu0 %v3589_v48  ;;  %v3300_v2 = vpop.f32.mrb[34].mxu1 }
 0x34e   : > { %v5673_v59 = vpop.f32.mrb[35].mxu1 }
 0x353   : > { %v7169_v63 = vpop.f32.mrb[36].mxu1 }
 0x354   : > { %v3595_v53 = vsel %vm3561_vm2, %v7169_v63, -inf  ;;  %v5684_v42 = vpop.f32.mrb[37].mxu1 }
 0x355   : > { %3596 = vmax.xlane.f32.xlu0 %v3595_v53  ;;  %v3386_v40 = vpop.f32.mrb[38].mxu1 }
 0x356   : > { %v5685_v56 = vpop.f32.mrb[39].mxu1 }
 0x359   : > { %1796 = vrot.lane.b32.xlu1 %v6955_v3, %s6246_s20 }
 0x35b   : > { %v7175_v44 = vpop.f32.mrb[40].mxu1 }
 0x35c   : > { %v3601_v10 = vsel %vm3561_vm2, %v7175_v44, -inf  ;;  %v5696_v35 = vpop.f32.mrb[41].mxu1 }
 0x35d   : > { %3602 = vmax.xlane.f32.xlu0 %v3601_v10  ;;  %v3472_v55 = vpop.f32.mrb[42].mxu1 }
 0x35e   : > { %v5697_v6 = vpop.f32.mrb[43].mxu1 }
 0x363   : > { %v7179_v46 = vpop.f32.mrb[44].mxu1 }
 0x364   : > { %v5708_v24 = vpop.f32.mrb[45].mxu1  ;;  %v3607_v54 = vsel %vm3561_vm2, %v7179_v46, -inf }
 0x365   : > { %v3558_v23 = vpop.f32.mrb[46].mxu1 }
 0x366   : > { %v5709_v58 = vpop.f32.mrb[47].mxu1 }
 0x373   : > { %1788 = vrot.lane.b32.xlu0 %v6955_v3, %s6248_s26 }
 0x392   : > { %3608 = vmax.xlane.f32.xlu0 %v3607_v54 }
 0x3aa   : > { %v3564_v16 = vpop.xlane.xlu0 %3563 }
 0x3ab   : > { %v3610_v61 = vsub.f32 %v7117_v27, %v3564_v16 }
 0x3ad   : > { %v3626_v5 = vmul.f32 1.442695, %v3610_v61  ;;  %v3576_v4 = vpop.xlane.xlu1 %3575 }
 0x3ae   : > { %v3614_v11 = vsub.f32 %v7121_v19, %v3576_v4 }
 0x3af   : > { %5953 = vpow2.f32 %v3626_v5 }
 0x3b0   : > { %v3634_v60 = vmul.f32 1.442695, %v3614_v11 }
 0x3b2   : > { %5955 = vpow2.f32 %v3634_v60 }
 0x3b5   : > { %v3582_v50 = vpop.xlane.xlu1 %3581 }
 0x3b6   : > { %v3616_v7 = vsub.f32 %v7127_v28, %v3582_v50 }
 0x3b8   : > { %v3638_v45 = vmul.f32 1.442695, %v3616_v7 }
 0x3b9   : > { %v7196_v17 = vpop.eup %5953  ;;  %v3567_v47 = vpop.xlane.xlu1 %3566 }
 0x3ba   : > { %v3570_v36 = vpop.xlane.xlu0 %3569  ;;  %v3658_v33 = vsel %vm3561_vm2, %v7196_v17, 0.0  ;;  %5957 = vpow2.f32 %v3638_v45  ;;  %v3611_v27 = vsub.f32 %v7125_v18, %v3567_v47 }
 0x3bb   : > { %v3612_v22 = vsub.f32 %v7131_v38, %v3570_v36  ;;  %3659 = vadd.xlane.f32.xlu1 %v3658_v33 }
 0x3bc   : > { %v7202_v19 = vpop.eup %5955  ;;  %v3628_v62 = vmul.f32 1.442695, %v3611_v27 }
 0x3bd   : > { %v3630_v37 = vmul.f32 1.442695, %v3612_v22  ;;  %v3588_v48 = vpop.xlane.xlu1 %3587  ;;  %v3670_v28 = vsel %vm3561_vm2, %v7202_v19, 0.0 }
 0x3be   : > { %5959 = vpow2.f32 %v3628_v62  ;;  %v3618_v29 = vsub.f32 %v7137_v15, %v3588_v48  ;;  %3671 = vadd.xlane.f32.xlu0 %v3670_v28 }
 0x3bf   : > { %5961 = vpow2.f32 %v3630_v37 }
 0x3c0   : > { %v3642_v2 = vmul.f32 1.442695, %v3618_v29 }
 0x3c2   : > { %v3573_v59 = vpop.xlane.xlu0 %3572  ;;  %5963 = vpow2.f32 %v3642_v2 }
 0x3c3   : > { %v3613_v18 = vsub.f32 %v7141_v52, %v3573_v59 }
 0x3c4   : > { %v7208_v38 = vpop.eup %5957 }
 0x3c5   : > { %v3632_v53 = vmul.f32 1.442695, %v3613_v18  ;;  %v3594_v42 = vpop.xlane.xlu1 %3593  ;;  %v3676_v40 = vsel %vm3561_vm2, %v7208_v38, 0.0 }
 0x3c6   : > { %v3620_v56 = vsub.f32 %v7145_v12, %v3594_v42  ;;  %3677 = vadd.xlane.f32.xlu0 %v3676_v40 }
 0x3c7   : > { %5965 = vpow2.f32 %v3632_v53 }
 0x3c8   : > { %v7213_v10 = vpop.eup %5959  ;;  %v3646_v15 = vmul.f32 1.442695, %v3620_v56 }
 0x3c9   : > { %v3661_v55 = vsel %vm3561_vm2, %v7213_v10, 0.0  ;;  %v7217_v6 = vpop.eup %5961 }
 0x3ca   : > { %v3579_v35 = vpop.xlane.xlu0 %3578  ;;  %5967 = vpow2.f32 %v3646_v15  ;;  %3662 = vadd.xlane.f32.xlu0 %v3661_v55  ;;  %v3664_v58 = vsel %vm3561_vm2, %v7217_v6, 0.0 }
 0x3cb   : > { %v3615_v52 = vsub.f32 %v7149_v20, %v3579_v35 }
 0x3cc   : > { %v7220_v24 = vpop.eup %5963 }
 0x3cd   : > { %v3636_v23 = vmul.f32 1.442695, %v3615_v52  ;;  %v3682_v12 = vsel %vm3561_vm2, %v7220_v24, 0.0  ;;  %v3600_v37 = vpop.xlane.xlu1 %3599 }
 0x3ce   : > { %3683 = vadd.xlane.f32.xlu1 %v3682_v12  ;;  %3665 = vadd.xlane.f32.xlu0 %v3664_v58  ;;  %v3622_v48 = vsub.f32 %v7153_v39, %v3600_v37 }
 0x3cf   : > { %5969 = vpow2.f32 %v3636_v23 }
 0x3d0   : > { %v3650_v2 = vmul.f32 1.442695, %v3622_v48 }
 0x3d1   : > { %v7226_v54 = vpop.eup %5965 }
 0x3d2   : > { %v3585_v16 = vpop.xlane.xlu0 %3584  ;;  %v3667_v61 = vsel %vm3561_vm2, %v7226_v54, 0.0 }
 0x3d3   : > { %v3617_v20 = vsub.f32 %v7157_v8, %v3585_v16  ;;  %3668 = vadd.xlane.f32.xlu1 %v3667_v61  ;;  %v1829_v16 = vshrl.u32 %v7187_v30, 16  ;;  %v1820_v61 = vshrl.u32 %v6607_v51, 16 }
 0x3d4   : > { %v7231_v5 = vpop.eup %5967 }
 0x3d5   : > { %v3640_v4 = vmul.f32 1.442695, %v3617_v20  ;;  %v3688_v11 = vsel %vm3561_vm2, %v7231_v5, 0.0  ;;  %v3606_v28 = vpop.xlane.xlu1 %3605  ;;  %v1821_v20 = vshrl.u32 %v7189_v43, 16 }
 0x3d6   : > { %3689 = vadd.xlane.f32.xlu0 %v3688_v11  ;;  %v3624_v59 = vsub.f32 %v7161_v14, %v3606_v28 }
 0x3d7   : > { %5971 = vpow2.f32 %v3640_v4  ;;  %v1826_v4 = vpack.i.b16 %v7187_v30, %v7185_v21 }
 0x3d9   : > { %v7235_v60 = vpop.eup %5969  ;;  %v2018_v30 = vrot.slane %v1826_v4, %v6638_v13 }
 0x3da   : > { %v3591_v50 = vpop.xlane.xlu0 %3590  ;;  %v3673_v7 = vsel %vm3561_vm2, %v7235_v60, 0.0 }
 0x3db   : > { %v3619_v45 = vsub.f32 %v7165_v34, %v3591_v50  ;;  %3674 = vadd.xlane.f32.xlu1 %v3673_v7  ;;  %v1822_v7 = vpack.i.b16 %v1821_v20, %v1820_v61 }
 0x3dd   : > { %v3644_v47 = vmul.f32 1.442695, %v3619_v45  ;;  %v2011_v45 = vcombine.high %v1826_v4, %v6629_v1  ;;  %v2069_v48 = vrot.slane %v1822_v7, %v6638_v13 }
 0x3df   : > { %5973 = vpow2.f32 %v3644_v47 }
 0x3e1   : > { %v7240_v8 = vpop.eup %5971 }
 0x3e2   : > { %v3679_v36 = vsel %vm3561_vm2, %v7240_v8, 0.0  ;;  %v3597_v22 = vpop.xlane.xlu0 %3596 }
 0x3e3   : > { %3680 = vadd.xlane.f32.xlu0 %v3679_v36  ;;  %v3621_v34 = vsub.f32 %v7169_v63, %v3597_v22  ;;  %v3654_v63 = vmul.f32 1.442695, %v3624_v59  ;;  %v1797_v36 = vpop.permute.xlu1 %1796 }
 0x3e5   : > { %v3648_v62 = vmul.f32 1.442695, %v3621_v34 }
 0x3e7   : > { %5975 = vpow2.f32 %v3648_v62 }
 0x3e8   : > { %5977 = vpow2.f32 %v3650_v2 }
 0x3e9   : > { %v7244_v33 = vpop.eup %5973  ;;  %5979 = vpow2.f32 %v3654_v63 }
 0x3ea   : > { %v3685_v27 = vsel %vm3561_vm2, %v7244_v33, 0.0  ;;  %v3603_v53 = vpop.xlane.xlu0 %3602 }
 0x3eb   : > { %3686 = vadd.xlane.f32.xlu0 %v3685_v27  ;;  %v3623_v23 = vsub.f32 %v7175_v44, %v3603_v53  ;;  %v1818_v44 = vpack.i.b16 %v7189_v43, %v6607_v51  ;;  %v2025_v43 = vrot.slane %v2011_v45, %v6638_v13 }
 0x3ec   : > { %1790 = vrot.lane.b32.xlu1 %v6942_v25, %s6248_s26 }
 0x3ed   : > { %v3652_v58 = vmul.f32 1.442695, %v3623_v23  ;;  %v1996_v47 = vcombine.high %v1818_v44, %v6629_v1  ;;  %v2003_v51 = vrot.slane %v1818_v44, %v6638_v13  ;;  %v1837_v44 = vshrl.u32 %v7191_v9, 16 }
 0x3ee   : > { %v7259_v42 = vpop.permute.xlu0 %1788 }
 0x3ef   : > { %v2010_v34 = vrot.slane %v1996_v47, %v6638_v13  ;;  %v2026_v59 = vcombine.low %v2003_v51, %v2018_v30 }
 0x3f1   : > { %v7254_v29 = vpop.eup %5975  ;;  %v2042_v63 = vcombine.low %v2010_v34, %v2025_v43  ;;  %v2043_v53 = vcombine.high %v2010_v34, %v2025_v43  ;;  %v1842_v43 = vpack.i.b16 %v1797_v36, %v7259_v42 }
 0x3f2   : > { %v3691_v18 = vsel %vm3561_vm2, %v7254_v29, 0.0  ;;  %v7261_v40 = vpop.eup %5977 }
 0x3f3   : > { %v3694_v39 = vsel %vm3561_vm2, %v7261_v40, 0.0  ;;  %v7265_v15 = vpop.eup %5979 }
 0x3f4   : > { %v3700_v55 = vsel %vm3561_vm2, %v7265_v15, 0.0 }
 0x401   : > { %1782 = vrot.lane.b32.xlu0 %v6942_v25, %s6247_s27 }
 0x410   : > { %3692 = vadd.xlane.f32.xlu1 %v3691_v18  ;;  %v2027_v18 = vcombine.high %v2003_v51, %v2018_v30 }
 0x412   : > { %v2041_v23 = vrot.slane %v2027_v18, %v6646_v26  ;;  %v1834_v18 = vpack.i.b16 %v7191_v9, %v6955_v3 }
 0x41f   : > { %v3609_v56 = vpop.xlane.xlu0 %3608 }
 0x420   : > { %v3625_v14 = vsub.f32 %v7179_v46, %v3609_v56  ;;  %3695 = vadd.xlane.f32.xlu0 %v3694_v39  ;;  %v1828_v46 = vshrl.u32 %v7185_v21, 16  ;;  %v2062_v21 = vcombine.high %v1822_v7, %v6629_v1 }
 0x421   : > { %1798 = vrot.lane.b32.xlu1 %v6942_v25, %s6246_s20 }
 0x422   : > { %v3656_v35 = vmul.f32 1.442695, %v3625_v14  ;;  %v1830_v50 = vpack.i.b16 %v1829_v16, %v1828_v46  ;;  %v2076_v2 = vrot.slane %v2062_v21, %v6638_v13  ;;  %v2057_v46 = vrot.slane %v2043_v53, %v6646_v26 }
 0x423   : > { %v1836_v16 = vshrl.u32 %v6955_v3, 16 }
 0x424   : > { %5981 = vpow2.f32 %v3656_v35  ;;  %3701 = vadd.xlane.f32.xlu0 %v3700_v55  ;;  %v2077_v22 = vcombine.high %v1830_v50, %v6629_v1  ;;  %v2084_v37 = vrot.slane %v1830_v50, %v6638_v13  ;;  %v2034_v55 = vrot.slane %v2026_v59, %v6646_v26 }
 0x425   : > { %5983 = vpow2.f32 %v3652_v58  ;;  %v2050_v58 = vrot.slane %v2042_v63, %v6646_v26  ;;  %v1845_v50 = vshrl.u32 %v1797_v36, 16  ;;  %v2143_v36 = vcombine.high %v1842_v43, %v6629_v1 }
 0x426   : > { %v2091_v28 = vrot.slane %v2077_v22, %v6638_v13  ;;  %v2092_v56 = vcombine.low %v2069_v48, %v2084_v37  ;;  %v2093_v39 = vcombine.high %v2069_v48, %v2084_v37  ;;  %v5407_v22 = vcombine.high %v2034_v55, %v2041_v23 }
 0x427   : > { %v2508_v30 = vcombine.low %v2050_v58, %v2057_v46  ;;  %v5408_v51 = vcombine.high %v2050_v58, %v2057_v46 }
 0x428   : > { %v2108_v14 = vcombine.low %v2076_v2, %v2091_v28  ;;  %v2109_v35 = vcombine.high %v2076_v2, %v2091_v28  ;;  %v2100_v20 = vrot.slane %v2092_v56, %v6646_v26  ;;  %v2107_v4 = vrot.slane %v2093_v39, %v6646_v26 }
 0x429   : > { %v1838_v28 = vpack.i.b16 %v1837_v44, %v1836_v16  ;;  %v2507_v56 = vrot.slane %v5407_v22, %v6638_v13  ;;  %v2157_v16 = vrot.slane %v2143_v36, %v6638_v13 }
 0x42a   : > { %v2116_v7 = vrot.slane %v2108_v14, %v6646_v26  ;;  %v2123_v45 = vrot.slane %v2109_v35, %v6646_v26  ;;  %v2542_v37 = vcombine.low %v2100_v20, %v2107_v4  ;;  %v5409_v48 = vcombine.high %v2100_v20, %v2107_v4 }
 0x42b   : > { %v2194_v9 = vcombine.high %v1838_v28, %v6629_v1 }
 0x42c   : > { %v2558_v2 = vcombine.low %v2116_v7, %v2123_v45  ;;  %v5410_v59 = vcombine.high %v2116_v7, %v2123_v45  ;;  %v2549_v35 = vrot.slane %v2542_v37, %v6638_v13  ;;  %v2557_v3 = vrot.slane %v5409_v48, %v6638_v13 }
 0x42d   : > { %v2150_v7 = vrot.slane %v1842_v43, %v6638_v13 }
 0x42e   : > { %v7272_v52 = vpop.eup %5981  ;;  %v2574_v44 = vcombine.low %v2549_v35, %v2557_v3 }
 0x42f   : > { %v3703_v12 = vsel %vm3561_vm2, %v7272_v52, 0.0  ;;  %v7285_v11 = vpop.eup %5983 }
 0x430   : > { %3704 = vadd.xlane.f32.xlu0 %v3703_v12  ;;  %v3697_v27 = vsel %vm3561_vm2, %v7285_v11, 0.0  ;;  %v1844_v12 = vshrl.u32 %v7259_v42, 16  ;;  %v2515_v42 = vrot.slane %v2508_v30, %v6638_v13  ;;  %v2581_v43 = vrot.slane %v2574_v44, %v6646_v26 }
 0x432   : > { %v1846_v21 = vpack.i.b16 %v1845_v50, %v1844_v12  ;;  %v2573_v12 = vrot.slane %v5410_v59, %v6638_v13 }
 0x434   : > { %v2209_v39 = vcombine.high %v1846_v21, %v6629_v1  ;;  %v2216_v4 = vrot.slane %v1846_v21, %v6638_v13 }
 0x436   : > { %v2223_v58 = vrot.slane %v2209_v39, %v6638_v13 }
 0x445   : > { %3698 = vadd.xlane.f32.xlu1 %v3697_v27  ;;  %v2492_v27 = vcombine.low %v2034_v55, %v2041_v23  ;;  %v2128_v55 = vcombine.high %v1834_v18, %v6629_v1  ;;  %v2565_v23 = vrot.slane %v2558_v2, %v6638_v13 }
 0x447   : > { %v2499_v53 = vrot.slane %v2492_v27, %v6638_v13  ;;  %v2142_v50 = vrot.slane %v2128_v55, %v6638_v13  ;;  %v2582_v45 = vcombine.low %v2565_v23, %v2573_v12 }
 0x448   : > { %v3660_v62 = vpop.xlane.xlu1 %3659 }
 0x449   : > { %5985 = vrcp.f32 %v3660_v62  ;;  %v2524_v46 = vcombine.low %v2499_v53, %v2507_v56  ;;  %v2175_v37 = vcombine.high %v2142_v50, %v2157_v16 }
 0x44b   : > { %v7307_v61 = vpop.xlane.xlu0 %3671  ;;  %v2531_v30 = vrot.slane %v2524_v46, %v6646_v26 }
 0x453   : > { %v5986_v47 = vpop.eup %5985  ;;  %v7316_v62 = vpop.xlane.xlu0 %3677 }
 0x454   : > { %v3722_v34 = vmul.f32 %v5986_v47, %v7196_v17  ;;  %v2523_v17 = vrot.slane %v5408_v51, %v6638_v13  ;;  %v2201_v47 = vrot.slane %v1838_v28, %v6638_v13  ;;  %v2135_v51 = vrot.slane %v1834_v18, %v6638_v13 }
 0x455   : > { %v2589_v28 = vrot.slane %v2582_v45, %v6646_v26 }
 0x456   : > { %v3738_v63 = vpack.c.bf16 %v3722_v34, %v3722_v34  ;;  %v2532_v49 = vcombine.low %v2515_v42, %v2523_v17  ;;  %v2174_v34 = vcombine.low %v2142_v50, %v2157_v16  ;;  %v2224_v2 = vcombine.low %v2201_v47, %v2216_v4 }
 0x457   : > { %v3663_v14 = vpop.xlane.xlu0 %3662  ;;  %v2225_v59 = vcombine.high %v2201_v47, %v2216_v4  ;;  %v2159_v53 = vcombine.high %v2135_v51, %v2150_v7  ;;  %v2189_v17 = vrot.slane %v2175_v37, %v6646_v26  ;;  %v2590_v23 = vcombine.low %v2581_v43, %v2589_v28 }
 0x458   : > { %5713 = vmatmul.mubr.msk.bf16.vlgmr.msra.gmra.mrb[32].mxu0 %vm3561_vm2, %v3738_v63  ;;  %5987 = vrcp.f32 %v3663_v14  ;;  %v2539_v21 = vrot.slane %v2532_v49, %v6646_v26  ;;  %v2158_v63 = vcombine.low %v2135_v51, %v2150_v7  ;;  %v2182_v42 = vrot.slane %v2174_v34, %v6646_v26 }
 0x459   : > { %5723 = vmatpush3.bf16.msra.mxu0 %v2802_v32  ;;  %5724 = vmatprep.mubr.msk.bf16.mxu0 %vm6250_vm0, %v6249_v41  ;;  %v2208_v32 = vrot.slane %v2194_v9, %v6638_v13  ;;  %v2232_v14 = vrot.slane %v2224_v2, %v6646_v26  ;;  %v2239_v35 = vrot.slane %v2225_v59, %v6646_v26  ;;  %v2813_v7 = vshrl.u32 %v2590_v23, 16 }
 0x45a   : > { %5734 = vmatprep.subr.bf16.mxu0 %v6249_v41  ;;  %v2540_v3 = vcombine.low %v2531_v30, %v2539_v21  ;;  %v2173_v9 = vrot.slane %v2159_v53, %v6646_v26  ;;  %v2608_v16 = vcombine.low %v2182_v42, %v2189_v17 }
 0x45b   : > { %v7341_v20 = vpop.xlane.xlu1 %3683  ;;  %v3666_v31 = vpop.xlane.xlu0 %3665  ;;  %v2240_v27 = vcombine.low %v2208_v32, %v2223_v58  ;;  %v2241_v22 = vcombine.high %v2208_v32, %v2223_v58  ;;  %v5413_v32 = vcombine.high %v2232_v14, %v2239_v35 }
 0x45c   : > { %5989 = vrcp.f32 %v3666_v31  ;;  %v5412_v31 = vcombine.high %v2182_v42, %v2189_v17  ;;  %v2812_v50 = vshrl.u32 %v2540_v3, 16  ;;  %v2810_v37 = vpack.i.b16 %v2590_v23, %v2540_v3 }
 0x45d   : > { %v2248_v39 = vrot.slane %v2240_v27, %v6646_v26  ;;  %v2255_v18 = vrot.slane %v2241_v22, %v6646_v26  ;;  %v2615_v2 = vrot.slane %v2608_v16, %v6638_v13 }
 0x45f   : > { %v2658_v12 = vcombine.low %v2248_v39, %v2255_v18  ;;  %v5414_v58 = vcombine.high %v2248_v39, %v2255_v18 }
 0x460   : > { %v3669_v48 = vpop.xlane.xlu1 %3668 }
 0x461   : > { %5991 = vrcp.f32 %v3669_v48  ;;  %v2665_v22 = vrot.slane %v2658_v12, %v6638_v13  ;;  %v2541_v48 = vcombine.high %v2531_v30, %v2539_v21 }
 0x462   : > { %5993 = vrcp.f32 %v7307_v61  ;;  %v5988_v56 = vpop.eup %5987  ;;  %v2166_v61 = vrot.slane %v2158_v63, %v6646_v26  ;;  %v2657_v63 = vrot.slane %v5413_v32, %v6638_v13 }
 0x463   : > { %v3723_v36 = vmul.f32 %v5988_v56, %v7213_v10  ;;  %v2642_v10 = vcombine.low %v2232_v14, %v2239_v35  ;;  %v3690_v34 = vpop.xlane.xlu0 %3689  ;;  %v2814_v56 = vpack.i.b16 %v2813_v7, %v2812_v50 }
 0x464   : > { %v2592_v44 = vcombine.low %v2166_v61, %v2173_v9  ;;  %v5411_v47 = vcombine.high %v2166_v61, %v2173_v9 }
 0x465   : > { %v3739_v55 = vpack.c.bf16 %v3723_v36, %v3723_v36  ;;  %v2649_v59 = vrot.slane %v2642_v10, %v6638_v13 }
 0x466   : > { %v5990_v46 = vpop.eup %5989  ;;  %v2599_v39 = vrot.slane %v2592_v44, %v6638_v13  ;;  %v2607_v30 = vrot.slane %v5411_v47, %v6638_v13 }
 0x467   : > { %5719 = vmatmul.mubr.msk.bf16.vlgmr.msra.gmra.mrb[48].mxu1 %vm3561_vm2, %v3739_v55  ;;  %v3724_v4 = vmul.f32 %v5990_v46, %v7217_v6  ;;  %v2673_v6 = vrot.slane %v5414_v58, %v6638_v13  ;;  %v2674_v36 = vcombine.low %v2649_v59, %v2657_v63 }
 0x468   : > { %v3675_v49 = vpop.xlane.xlu1 %3674  ;;  %5729 = vmatpush3.bf16.msra.mxu1 %v7112_v57  ;;  %5730 = vmatprep.mubr.msk.bf16.mxu1 %vm6250_vm0, %v6249_v41  ;;  %v2624_v35 = vcombine.low %v2599_v39, %v2607_v30 }
 0x469   : > { %5995 = vrcp.f32 %v3675_v49  ;;  %5740 = vmatprep.subr.bf16.mxu1 %v6249_v41  ;;  %v3740_v27 = vpack.c.bf16 %v3724_v4, %v3724_v4  ;;  %v2682_v18 = vcombine.low %v2665_v22, %v2673_v6  ;;  %v2681_v12 = vrot.slane %v2674_v36, %v6646_v26 }
 0x46a   : > { %5997 = vrcp.f32 %v7316_v62  ;;  %v2623_v62 = vrot.slane %v5412_v31, %v6638_v13  ;;  %v2631_v16 = vrot.slane %v2624_v35, %v6646_v26 }
 0x46b   : > { %v5992_v45 = vpop.eup %5991  ;;  %5725 = vmatmul.mubr.msk.bf16.vlgmr.msra.gmra.mrb[36].mxu0 %vm3561_vm2, %v3740_v27  ;;  %v2689_v3 = vrot.slane %v2682_v18, %v6646_v26 }
 0x46c   : > { %v5994_v51 = vpop.eup %5993  ;;  %v3725_v57 = vmul.f32 %v5992_v45, %v7226_v54  ;;  %5735 = vmatpush3.bf16.msra.mxu0 %v2810_v37  ;;  %5736 = vmatprep.mubr.msk.bf16.mxu0 %vm6250_vm0, %v6249_v41  ;;  %v2591_v54 = vcombine.high %v2581_v43, %v2589_v28  ;;  %v2632_v17 = vcombine.low %v2615_v2, %v2623_v62  ;;  %v2820_v43 = vshrl.u32 %v2541_v48, 16 }
 0x46d   : > { %v3726_v21 = vmul.f32 %v5994_v51, %v7202_v19  ;;  %5746 = vmatprep.subr.bf16.mxu0 %v6249_v41  ;;  %v2691_v22 = vcombine.high %v2681_v12, %v2689_v3 }
 0x46e   : > { %v3741_v53 = vpack.c.bf16 %v3725_v57, %v3725_v57  ;;  %v2821_v14 = vshrl.u32 %v2591_v54, 16  ;;  %v2818_v55 = vpack.i.b16 %v2591_v54, %v2541_v48  ;;  %v2639_v23 = vrot.slane %v2632_v17, %v6646_v26 }
 0x46f   : > { %v3742_v19 = vpack.c.bf16 %v3726_v21, %v3726_v21  ;;  %v2837_v57 = vshrl.u32 %v2691_v22, 16 }
 0x470   : > { %5731 = vmatmul.mubr.msk.bf16.vlgmr.msra.gmra.mrb[52].mxu1 %vm3561_vm2, %v3741_v53  ;;  %v3681_v42 = vpop.xlane.xlu0 %3680  ;;  %v2822_v46 = vpack.i.b16 %v2821_v14, %v2820_v43  ;;  %v2640_v49 = vcombine.low %v2631_v16, %v2639_v23  ;;  %v2641_v6 = vcombine.high %v2631_v16, %v2639_v23  ;;  %v1791_v53 = vpop.permute.xlu1 %1790 }
 0x471   : > { %5741 = vmatpush3.bf16.msra.mxu1 %v2814_v56  ;;  %5999 = vrcp.f32 %v3681_v42  ;;  %5742 = vmatprep.mubr.msk.bf16.mxu1 %vm6250_vm0, %v6249_v41  ;;  %v1852_v56 = vshrl.u32 %v6942_v25, 16  ;;  %v1860_v42 = vshrl.u32 %v1791_v53, 16 }
 0x472   : > { %6001 = vrcp.f32 %v7341_v20  ;;  %5752 = vmatprep.subr.bf16.mxu1 %v6249_v41  ;;  %v2828_v7 = vshrl.u32 %v2640_v49, 16  ;;  %v2836_v48 = vshrl.u32 %v2641_v6, 16 }
 0x473   : > { %v5996_v28 = vpop.eup %5995  ;;  %5737 = vmatmul.mubr.msk.bf16.vlgmr.msra.gmra.mrb[40].mxu0 %vm3561_vm2, %v3742_v19 }
 0x474   : > { %v5998_v61 = vpop.eup %5997  ;;  %v3727_v9 = vmul.f32 %v5996_v28, %v7235_v60  ;;  %5747 = vmatpush3.bf16.msra.mxu0 %v2818_v55  ;;  %5748 = vmatprep.mubr.msk.bf16.mxu0 %vm6250_vm0, %v6249_v41  ;;  %v2690_v60 = vcombine.low %v2681_v12, %v2689_v3  ;;  %v2838_v59 = vpack.i.b16 %v2837_v57, %v2836_v48 }
 0x475   : > { %v3728_v58 = vmul.f32 %v5998_v61, %v7208_v38  ;;  %5758 = vmatprep.subr.bf16.mxu0 %v6249_v41 }
 0x476   : > { %v3743_v20 = vpack.c.bf16 %v3727_v9, %v3727_v9  ;;  %v2829_v32 = vshrl.u32 %v2690_v60, 16  ;;  %v2826_v50 = vpack.i.b16 %v2690_v60, %v2640_v49 }
 0x477   : > { %v3744_v38 = vpack.c.bf16 %v3728_v58, %v3728_v58 }
 0x478   : > { %5743 = vmatmul.mubr.msk.bf16.vlgmr.msra.gmra.mrb[56].mxu1 %vm3561_vm2, %v3743_v20  ;;  %v3687_v31 = vpop.xlane.xlu0 %3686  ;;  %v2830_v27 = vpack.i.b16 %v2829_v32, %v2828_v7 }
 0x479   : > { %5753 = vmatpush3.bf16.msra.mxu1 %v2822_v46  ;;  %6003 = vrcp.f32 %v3687_v31  ;;  %5754 = vmatprep.mubr.msk.bf16.mxu1 %vm6250_vm0, %v6249_v41 }
 0x47a   : > { %6005 = vrcp.f32 %v3690_v34  ;;  %5764 = vmatprep.subr.bf16.mxu1 %v6249_v41 }
 0x47b   : > { %v6000_v10 = vpop.eup %5999  ;;  %5749 = vmatmul.mubr.msk.bf16.vlgmr.msra.gmra.mrb[44].mxu0 %vm3561_vm2, %v3744_v38 }
 0x47c   : > { %v6002_v4 = vpop.eup %6001  ;;  %v3729_v44 = vmul.f32 %v6000_v10, %v7240_v8  ;;  %5759 = vmatpush3.bf16.msra.mxu0 %v2826_v50  ;;  %5760 = vmatprep.mubr.msk.bf16.mxu0 %vm6250_vm0, %v6249_v41  ;;  %v1783_v63 = vpop.permute.xlu0 %1782 }
 0x47d   : > { %v3730_v47 = vmul.f32 %v6002_v4, %v7220_v24  ;;  %5770 = vmatprep.subr.bf16.mxu0 %v6249_v41  ;;  %v2834_v24 = vpack.i.b16 %v2691_v22, %v2641_v6  ;;  %v1850_v54 = vpack.i.b16 %v1783_v63, %v6942_v25 }
 0x47e   : > { %v3745_v45 = vpack.c.bf16 %v3729_v44, %v3729_v44 }
 0x47f   : > { %v3746_v51 = vpack.c.bf16 %v3730_v47, %v3730_v47  ;;  %v2260_v21 = vcombine.high %v1850_v54, %v6629_v1  ;;  %v2267_v28 = vrot.slane %v1850_v54, %v6638_v13 }
 0x480   : > { %5755 = vmatmul.mubr.msk.bf16.vlgmr.msra.gmra.mrb[60].mxu1 %vm3561_vm2, %v3745_v45 }
 0x481   : > { %5765 = vmatpush3.bf16.msra.mxu1 %v2830_v27  ;;  %5766 = vmatprep.mubr.msk.bf16.mxu1 %vm6250_vm0, %v6249_v41  ;;  %v2274_v25 = vrot.slane %v2260_v21, %v6638_v13 }
 0x482   : > { %5776 = vmatprep.subr.bf16.mxu1 %v6249_v41 }
 0x483   : > { %v6004_v8 = vpop.eup %6003  ;;  %5761 = vmatmul.mubr.msk.bf16.vlgmr.msra.gmra.mrb[48].mxu0 %vm3561_vm2, %v3746_v51 }
 0x484   : > { %v6006_v34 = vpop.eup %6005  ;;  %v3731_v37 = vmul.f32 %v6004_v8, %v7244_v33  ;;  %5771 = vmatpush3.bf16.msra.mxu0 %v2834_v24  ;;  %5772 = vmatprep.mubr.msk.bf16.mxu0 %vm6250_vm0, %v6249_v41 }
 0x485   : > { %v3732_v62 = vmul.f32 %v6006_v34, %v7231_v5  ;;  %5782 = vmatprep.subr.bf16.mxu0 %v6249_v41  ;;  %v1853_v5 = vshrl.u32 %v1783_v63, 16 }
 0x486   : > { %v3747_v2 = vpack.c.bf16 %v3731_v37, %v3731_v37 }
 0x487   : > { %v3748_v33 = vpack.c.bf16 %v3732_v62, %v3732_v62  ;;  %v1854_v30 = vpack.i.b16 %v1853_v5, %v1852_v56 }
 0x488   : > { %5767 = vmatmul.mubr.msk.bf16.vlgmr.msra.gmra.mrb[64].mxu1 %vm3561_vm2, %v3747_v2 }
 0x489   : > { %5777 = vmatpush3.bf16.msra.mxu1 %v2838_v59  ;;  %5778 = vmatprep.mubr.msk.bf16.mxu1 %vm6250_vm0, %v6249_v41  ;;  %v2326_v43 = vcombine.high %v1854_v30, %v6629_v1  ;;  %v2333_v23 = vrot.slane %v1854_v30, %v6638_v13 }
 0x48a   : > { %5788 = vmatprep.subr.bf16.mxu1 %v6249_v41 }
 0x48b   : > { %5773 = vmatmul.mubr.msk.bf16.vlgmr.msra.gmra.mrb[52].mxu0 %vm3561_vm2, %v3748_v33  ;;  %v2340_v12 = vrot.slane %v2326_v43, %v6638_v13 }
 0x48c   : > { %5784 = vmatprep.mubr.msk.bf16.mxu0 %vm6250_vm0, %v6249_v41 }
 0x49d   : > { %v3693_v39 = vpop.xlane.xlu1 %3692 }
 0x49e   : > { %6007 = vrcp.f32 %v3693_v39 }
 0x4a1   : > { %v1799_v18 = vpop.permute.xlu1 %1798 }
 0x4a2   : > { %v1858_v17 = vpack.i.b16 %v1799_v18, %v1791_v53  ;;  %v1861_v36 = vshrl.u32 %v1799_v18, 16 }
 0x4a4   : > { %v1862_v19 = vpack.i.b16 %v1861_v36, %v1860_v42  ;;  %v2275_v14 = vcombine.high %v1858_v17, %v6629_v1  ;;  %v2282_v35 = vrot.slane %v1858_v17, %v6638_v13 }
 0x4a6   : > { %v2289_v3 = vrot.slane %v2275_v14, %v6638_v13  ;;  %v2290_v61 = vcombine.low %v2267_v28, %v2282_v35  ;;  %v2291_v9 = vcombine.high %v2267_v28, %v2282_v35  ;;  %v2341_v55 = vcombine.high %v1862_v19, %v6629_v1 }
 0x4a7   : > { %v2348_v20 = vrot.slane %v1862_v19, %v6638_v13 }
 0x4a8   : > { %v6008_v58 = vpop.eup %6007  ;;  %v2298_v46 = vrot.slane %v2290_v61, %v6646_v26  ;;  %v2305_v16 = vrot.slane %v2291_v9, %v6646_v26  ;;  %v2306_v60 = vcombine.low %v2274_v25, %v2289_v3  ;;  %v2307_v31 = vcombine.high %v2274_v25, %v2289_v3 }
 0x4a9   : > { %v3733_v49 = vmul.f32 %v6008_v58, %v7254_v29  ;;  %v2355_v10 = vrot.slane %v2341_v55, %v6638_v13  ;;  %v2356_v38 = vcombine.low %v2333_v23, %v2348_v20  ;;  %v2357_v32 = vcombine.high %v2333_v23, %v2348_v20 }
 0x4aa   : > { %v2314_v1 = vrot.slane %v2306_v60, %v6646_v26  ;;  %v2321_v4 = vrot.slane %v2307_v31, %v6646_v26  ;;  %v2692_v44 = vcombine.low %v2298_v46, %v2305_v16  ;;  %v5415_v50 = vcombine.high %v2298_v46, %v2305_v16 }
 0x4ab   : > { %v2364_v7 = vrot.slane %v2356_v38, %v6646_v26  ;;  %v2371_v45 = vrot.slane %v2357_v32, %v6646_v26  ;;  %v2372_v47 = vcombine.low %v2340_v12, %v2355_v10  ;;  %v2373_v27 = vcombine.high %v2340_v12, %v2355_v10 }
 0x4ac   : > { %v2699_v22 = vrot.slane %v2692_v44, %v6638_v13  ;;  %v2707_v29 = vrot.slane %v5415_v50, %v6638_v13  ;;  %v2708_v6 = vcombine.low %v2314_v1, %v2321_v4  ;;  %v5416_v8 = vcombine.high %v2314_v1, %v2321_v4 }
 0x4ad   : > { %v2380_v51 = vrot.slane %v2372_v47, %v6646_v26  ;;  %v2387_v57 = vrot.slane %v2373_v27, %v6646_v26  ;;  %v2742_v34 = vcombine.low %v2364_v7, %v2371_v45  ;;  %v5417_v37 = vcombine.high %v2364_v7, %v2371_v45  ;;  %v3696_v24 = vpop.xlane.xlu0 %3695 }
 0x4ae   : > { %v2715_v48 = vrot.slane %v2708_v6, %v6638_v13  ;;  %v2723_v2 = vrot.slane %v5416_v8, %v6638_v13  ;;  %v3749_v62 = vpack.c.bf16 %v3733_v49, %v3733_v49  ;;  %6009 = vrcp.f32 %v3696_v24 }
 0x4af   : > { %v2749_v59 = vrot.slane %v2742_v34, %v6638_v13  ;;  %v2757_v33 = vrot.slane %v5417_v37, %v6638_v13  ;;  %v2758_v63 = vcombine.low %v2380_v51, %v2387_v57  ;;  %v5418_v53 = vcombine.high %v2380_v51, %v2387_v57 }
 0x4b0   : > { %5779 = vmatmul.mubr.msk.bf16.vlgmr.msra.gmra.mrb[68].mxu1 %vm3561_vm2, %v3749_v62  ;;  %v2724_v5 = vcombine.low %v2699_v22, %v2707_v29  ;;  %v2732_v56 = vcombine.low %v2715_v48, %v2723_v2 }
 0x4b1   : > { %v3702_v54 = vpop.xlane.xlu0 %3701  ;;  %v2765_v39 = vrot.slane %v2758_v63, %v6638_v13  ;;  %v2773_v30 = vrot.slane %v5418_v53, %v6638_v13  ;;  %v2774_v21 = vcombine.low %v2749_v59, %v2757_v33  ;;  %5790 = vmatprep.mubr.msk.bf16.mxu1 %vm6250_vm0, %v6249_v41 }
 0x4b2   : > { %v2731_v18 = vrot.slane %v2724_v5, %v6646_v26  ;;  %v2739_v42 = vrot.slane %v2732_v56, %v6646_v26  ;;  %6011 = vrcp.f32 %v3702_v54 }
 0x4b3   : > { %v2782_v17 = vcombine.low %v2765_v39, %v2773_v30  ;;  %v2781_v43 = vrot.slane %v2774_v21, %v6646_v26 }
 0x4b4   : > { %v2740_v36 = vcombine.low %v2731_v18, %v2739_v42  ;;  %v2741_v12 = vcombine.high %v2731_v18, %v2739_v42 }
 0x4b5   : > { %v2789_v28 = vrot.slane %v2782_v17, %v6646_v26 }
 0x4b6   : > { %v2844_v35 = vshrl.u32 %v2740_v36, 16  ;;  %v2852_v38 = vshrl.u32 %v2741_v12, 16 }
 0x4b7   : > { %v2790_v19 = vcombine.low %v2781_v43, %v2789_v28  ;;  %v2791_v9 = vcombine.high %v2781_v43, %v2789_v28 }
 0x4b8   : > { %v6010_v14 = vpop.eup %6009 }
 0x4b9   : > { %v3734_v25 = vmul.f32 %v6010_v14, %v7261_v40  ;;  %v2842_v3 = vpack.i.b16 %v2790_v19, %v2740_v36  ;;  %v2845_v61 = vshrl.u32 %v2790_v19, 16  ;;  %v2850_v58 = vpack.i.b16 %v2791_v9, %v2741_v12 }
 0x4ba   : > { %v2853_v49 = vshrl.u32 %v2791_v9, 16 }
 0x4bb   : > { %5783 = vmatpush3.bf16.msra.mxu0 %v2842_v3  ;;  %v2846_v55 = vpack.i.b16 %v2845_v61, %v2844_v35  ;;  %v3750_v23 = vpack.c.bf16 %v3734_v25, %v3734_v25 }
 0x4bc   : > { %5794 = vmatprep.subr.bf16.mxu0 %v6249_v41  ;;  %v6012_v20 = vpop.eup %6011  ;;  %v2854_v4 = vpack.i.b16 %v2853_v49, %v2852_v38 }
 0x4bd   : > { %5789 = vmatpush3.bf16.msra.mxu1 %v2846_v55  ;;  %v3736_v40 = vmul.f32 %v6012_v20, %v7265_v15  ;;  %v3705_v60 = vpop.xlane.xlu0 %3704 }
 0x4be   : > { %5785 = vmatmul.mubr.msk.bf16.vlgmr.msra.gmra.mrb[56].mxu0 %vm3561_vm2, %v3750_v23  ;;  %5800 = vmatprep.subr.bf16.mxu1 %v6249_v41 }
 0x4bf   : > { %5795 = vmatpush3.bf16.msra.mxu0 %v2850_v58  ;;  %5796 = vmatprep.mubr.msk.bf16.mxu0 %vm6250_vm0, %v6249_v41  ;;  %v3752_v46 = vpack.c.bf16 %v3736_v40, %v3736_v40 }
 0x4c6   : > { %5797 = vmatmul.mubr.msk.bf16.vlgmr.msra.gmra.mrb[60].mxu0 %vm3561_vm2, %v3752_v46 }
 0x4d2   : > { %v3699_v16 = vpop.xlane.xlu1 %3698 }
 0x4d3   : > { %6013 = vrcp.f32 %v3699_v16 }
 0x4d4   : > { %6015 = vrcp.f32 %v3705_v60 }
 0x4dd   : > { %v6014_v31 = vpop.eup %6013 }
 0x4de   : > { %v3735_v10 = vmul.f32 %v6014_v31, %v7285_v11  ;;  %v6016_v1 = vpop.eup %6015 }
 0x4df   : > { %v3737_v15 = vmul.f32 %v6016_v1, %v7272_v52 }
 0x4e0   : > { %v3751_v32 = vpack.c.bf16 %v3735_v10, %v3735_v10 }
 0x4e1   : > { %v3753_v44 = vpack.c.bf16 %v3737_v15, %v3737_v15 }
 0x4e2   : > { %5791 = vmatmul.mubr.msk.bf16.vlgmr.msra.gmra.mrb[72].mxu1 %vm3561_vm2, %v3751_v32 }
 0x4e3   : > { %5801 = vmatpush3.bf16.msra.mxu1 %v2854_v4  ;;  %5802 = vmatprep.mubr.msk.bf16.mxu1 %vm6250_vm0, %v6249_v41 }
 0x4ea   : > { %5803 = vmatmul.mubr.msk.bf16.vlgmr.msra.gmra.mrb[76].mxu1 %vm3561_vm2, %v3753_v44 }
 0x52b   : > { %v3791_v50 = vpop.f32.mrb[32].mxu0 }
 0x52c   : > { %v5714_v7 = vpop.f32.mrb[33].mxu0  ;;  %v4442_v6 = vpack.c.bf16 %v3791_v50, %v3791_v50 }
 0x52d   : > { %v3794_v45 = vpop.f32.mrb[34].mxu0 }
 0x52e   : > { %v5715_v47 = vpop.f32.mrb[35].mxu0  ;;  %v4449_v41 = vrot.slane %v4442_v6, %v6638_v13 }
 0x53a   : > { %v3834_v11 = vpop.f32.mrb[48].mxu1 }
 0x53b   : > { %v5720_v27 = vpop.f32.mrb[49].mxu1  ;;  %v4476_v34 = vpack.c.bf16 %v3834_v11, %v3834_v11 }
 0x53c   : > { %v3837_v22 = vpop.f32.mrb[50].mxu1 }
 0x53d   : > { %v5721_v29 = vpop.f32.mrb[51].mxu1  ;;  %v4483_v53 = vrot.slane %v4476_v34, %v6638_v13 }
 0x53e   : > { %v3877_v8 = vpop.f32.mrb[36].mxu0 }
 0x53f   : > { %v4450_v51 = vpack.c.bf16 %v3877_v8, %v3877_v8  ;;  %v5726_v57 = vpop.f32.mrb[37].mxu0 }
 0x540   : > { %v3880_v37 = vpop.f32.mrb[38].mxu0 }
 0x541   : > { %v4457_v52 = vrot.slane %v4450_v51, %v6638_v13  ;;  %v5727_v24 = vpop.f32.mrb[39].mxu0 }
 0x543   : > { %v3920_v48 = vpop.f32.mrb[52].mxu1  ;;  %v4458_v59 = vcombine.low %v4449_v41, %v4457_v52  ;;  %v4459_v33 = vcombine.high %v4449_v41, %v4457_v52 }
 0x544   : > { %v4484_v2 = vpack.c.bf16 %v3920_v48, %v3920_v48  ;;  %v5732_v62 = vpop.f32.mrb[53].mxu1 }
 0x545   : > { %v3923_v63 = vpop.f32.mrb[54].mxu1  ;;  %v4466_v54 = vrot.slane %v4458_v59, %v6646_v26  ;;  %v4473_v39 = vrot.slane %v4459_v33, %v6646_v26 }
 0x546   : > { %v4491_v5 = vrot.slane %v4484_v2, %v6638_v13  ;;  %v5733_v56 = vpop.f32.mrb[55].mxu1  ;;  %v3963_v18 = vpop.f32.mrb[40].mxu0 }
 0x547   : > { %v4474_v42 = vcombine.high %v4466_v54, %v6252_v0  ;;  %v5738_v17 = vpop.f32.mrb[41].mxu0  ;;  %v4475_v19 = vcombine.high %v4473_v39, %v6252_v0  ;;  %v4718_v14 = vshrl.u32 %v4466_v54, 16  ;;  %v4734_v35 = vshrl.u32 %v4473_v39, 16 }
 0x548   : > { %v4492_v30 = vcombine.low %v4483_v53, %v4491_v5  ;;  %v4493_v21 = vcombine.high %v4483_v53, %v4491_v5  ;;  %v3966_v28 = vpop.f32.mrb[42].mxu0  ;;  %v4510_v46 = vpack.c.bf16 %v3963_v18, %v3963_v18 }
 0x549   : > { %v5739_v25 = vpop.f32.mrb[43].mxu0  ;;  %v4726_v20 = vshrl.u32 %v4474_v42, 16  ;;  %v4742_v32 = vshrl.u32 %v4475_v19, 16 }
 0x54a   : > { %v4500_v36 = vrot.slane %v4492_v30, %v6646_v26  ;;  %v4507_v43 = vrot.slane %v4493_v21, %v6646_v26  ;;  %v4517_v51 = vrot.slane %v4510_v46, %v6638_v13 }
 0x54b   : > { %v4006_v3 = vpop.f32.mrb[56].mxu1 }
 0x54c   : > { %v4508_v61 = vcombine.high %v4500_v36, %v6252_v0  ;;  %v4509_v9 = vcombine.high %v4507_v43, %v6252_v0  ;;  %v4716_v55 = vpack.i.b16 %v4500_v36, %v4466_v54  ;;  %v4719_v23 = vshrl.u32 %v4500_v36, 16  ;;  %v5744_v12 = vpop.f32.mrb[57].mxu1 }
 0x54d   : > { %v4732_v58 = vpack.i.b16 %v4507_v43, %v4473_v39  ;;  %v4735_v40 = vshrl.u32 %v4507_v43, 16  ;;  %v4009_v16 = vpop.f32.mrb[58].mxu1  ;;  %v4544_v22 = vpack.c.bf16 %v4006_v3, %v4006_v3 }
 0x54e   : > { %v4720_v60 = vpack.i.b16 %v4719_v23, %v4718_v14  ;;  %v4724_v31 = vpack.i.b16 %v4508_v61, %v4474_v42  ;;  %v4727_v49 = vshrl.u32 %v4508_v61, 16  ;;  %v4740_v10 = vpack.i.b16 %v4509_v9, %v4475_v19  ;;  %v5745_v38 = vpop.f32.mrb[59].mxu1  ;;  %v4049_v50 = vpop.f32.mrb[44].mxu0 }
 0x54f   : > { %v4736_v1 = vpack.i.b16 %v4735_v40, %v4734_v35  ;;  %v4743_v4 = vshrl.u32 %v4509_v9, 16  ;;  %v4842_v15 = vcombine.low %v4716_v55, %v4732_v58  ;;  %v4518_v47 = vpack.c.bf16 %v4049_v50, %v4049_v50  ;;  %v5750_v11 = vpop.f32.mrb[45].mxu0 }
 0x550   : > { %v4728_v44 = vpack.i.b16 %v4727_v49, %v4726_v20  ;;  %v4850_v7 = vcombine.low %v4724_v31, %v4740_v10  ;;  %v4052_v29 = vpop.f32.mrb[46].mxu0  ;;  %v4551_v53 = vrot.slane %v4544_v22, %v6638_v13 }
 0x551   : > { %v4744_v45 = vpack.i.b16 %v4743_v4, %v4742_v32  ;;  %v4892_v27 = vcombine.low %v4720_v60, %v4736_v1  ;;  %v4849_v6 = vrot.slane %v4842_v15, %v6638_v13  ;;  %v4525_v57 = vrot.slane %v4518_v47, %v6638_v13  ;;  %v5751_v34 = vpop.f32.mrb[47].mxu0 }
 0x552   : > { %v4857_v8 = vrot.slane %v4850_v7, %v6638_v13 }
 0x553   : > { %v4092_v37 = vpop.f32.mrb[60].mxu1  ;;  %v4900_v41 = vcombine.low %v4728_v44, %v4744_v45  ;;  %v4526_v2 = vcombine.low %v4517_v51, %v4525_v57  ;;  %v4527_v62 = vcombine.high %v4517_v51, %v4525_v57  ;;  %v7497_v33 = vrot.slane %v4892_v27, %v6638_v13 }
 0x554   : > { %v4552_v52 = vpack.c.bf16 %v4092_v37, %v4092_v37  ;;  %v5756_v24 = vpop.f32.mrb[61].mxu1  ;;  %v7494_v48 = vcombine.low %v4849_v6, %v4857_v8 }
 0x555   : > { %v4095_v59 = vpop.f32.mrb[62].mxu1  ;;  %v7500_v63 = vrot.slane %v4900_v41, %v6638_v13  ;;  %v4534_v54 = vrot.slane %v4526_v2, %v6646_v26  ;;  %v4541_v39 = vrot.slane %v4527_v62, %v6646_v26 }
 0x556   : > { %v4559_v5 = vrot.slane %v4552_v52, %v6638_v13  ;;  %v5757_v56 = vpop.f32.mrb[63].mxu1  ;;  %v4135_v42 = vpop.f32.mrb[48].mxu0  ;;  %v4881_v59 = vrot.slane %v7494_v48, %v6646_v26 }
 0x557   : > { %v4924_v30 = vcombine.low %v7497_v33, %v7500_v63  ;;  %v4542_v17 = vcombine.high %v4534_v54, %v6252_v0  ;;  %v5762_v36 = vpop.f32.mrb[49].mxu0  ;;  %v4543_v14 = vcombine.high %v4541_v39, %v6252_v0  ;;  %v4750_v35 = vshrl.u32 %v4534_v54, 16 }
 0x558   : > { %v4560_v21 = vcombine.low %v4551_v53, %v4559_v5  ;;  %v4561_v18 = vcombine.high %v4551_v53, %v4559_v5  ;;  %v4138_v19 = vpop.f32.mrb[50].mxu0  ;;  %v4766_v25 = vshrl.u32 %v4541_v39, 16  ;;  %v4578_v16 = vpack.c.bf16 %v4135_v42, %v4135_v42  ;;  %v5945_v53 = vld [vmem:[#allocation10] sm:$0xff]   ;;  %v5946_v5 = vld [vmem:[#allocation10 + $0x8] sm:$0xff]  }
 0x559   : > { %v5763_v3 = vpop.f32.mrb[51].mxu0  ;;  %v4758_v58 = vshrl.u32 %v4542_v17, 16  ;;  %v4774_v1 = vshrl.u32 %v4543_v14, 16  ;;  %5806 = vmatprep.subr.bf16.mxu0 %v5945_v53 }
 0x55a   : > { %v4568_v43 = vrot.slane %v4560_v21, %v6646_v26  ;;  %v4575_v28 = vrot.slane %v4561_v18, %v6646_v26  ;;  %v4585_v51 = vrot.slane %v4578_v16, %v6638_v13  ;;  %5807 = vmatpush3.bf16.msra.mxu0 %v5945_v53  ;;  %v5947_v18 = vld [vmem:[#allocation10 + $0x10] sm:$0xff]   ;;  %v5949_v3 = vld [vmem:[#allocation10 + $0x20] sm:$0xff]  }
 0x55b   : > { %v7512_v61 = vpop.f32.mrb[64].mxu1  ;;  %5808 = vmatprep.subr.bf16.mxu0 %v5946_v5 }
 0x55c   : > { %v4576_v9 = vcombine.high %v4568_v43, %v6252_v0  ;;  %v4577_v55 = vcombine.high %v4575_v28, %v6252_v0  ;;  %v4748_v23 = vpack.i.b16 %v4568_v43, %v4534_v54  ;;  %v4751_v12 = vshrl.u32 %v4568_v43, 16  ;;  %v5768_v20 = vpop.f32.mrb[65].mxu1 }
 0x55d   : > { %v4764_v40 = vpack.i.b16 %v4575_v28, %v4541_v39  ;;  %v4767_v46 = vshrl.u32 %v4575_v28, 16  ;;  %v4181_v60 = vpop.f32.mrb[66].mxu1  ;;  %v4931_v39 = vrot.slane %v4924_v30, %v6646_v26  ;;  %v5948_v30 = vld [vmem:[#allocation10 + $0x18] sm:$0xff]  }
 0x55e   : > { %v4752_v31 = vpack.i.b16 %v4751_v12, %v4750_v35  ;;  %v4756_v49 = vpack.i.b16 %v4576_v9, %v4542_v17  ;;  %v4759_v10 = vshrl.u32 %v4576_v9, 16  ;;  %v4772_v38 = vpack.i.b16 %v4577_v55, %v4543_v14  ;;  %v5769_v32 = vpop.f32.mrb[67].mxu1  ;;  %v4221_v7 = vpop.f32.mrb[52].mxu0  ;;  %5809 = vmatpush3.bf16.msra.mxu0 %v5946_v5  ;;  %v5950_v9 = vld [vmem:[#allocation10 + $0x28] sm:$0xff]  }
 0x55f   : > { %v4768_v4 = vpack.i.b16 %v4767_v46, %v4766_v25  ;;  %v4775_v15 = vshrl.u32 %v4577_v55, 16  ;;  %v4858_v44 = vcombine.low %v4748_v23, %v4764_v40  ;;  %v4586_v11 = vpack.c.bf16 %v4221_v7, %v4221_v7  ;;  %v5774_v27 = vpop.f32.mrb[53].mxu0  ;;  %5810 = vmatprep.subr.bf16.mxu0 %v5947_v18 }
 0x560   : > { %v4760_v50 = vpack.i.b16 %v4759_v10, %v4758_v58  ;;  %v4866_v45 = vcombine.low %v4756_v49, %v4772_v38  ;;  %v4224_v29 = vpop.f32.mrb[54].mxu0  ;;  %v4612_v55 = vpack.c.bf16 %v7512_v61, %v7512_v61 }
 0x561   : > { %v4776_v47 = vpack.i.b16 %v4775_v15, %v4774_v1  ;;  %v4908_v22 = vcombine.low %v4752_v31, %v4768_v4  ;;  %v4865_v6 = vrot.slane %v4858_v44, %v6638_v13  ;;  %v4593_v57 = vrot.slane %v4586_v11, %v6638_v13  ;;  %v5775_v34 = vpop.f32.mrb[55].mxu0 }
 0x562   : > { %v4873_v8 = vrot.slane %v4866_v45, %v6638_v13  ;;  %5811 = vmatpush3.bf16.msra.mxu0 %v5947_v18  ;;  %v4619_v46 = vrot.slane %v4612_v55, %v6638_v13 }
 0x563   : > { %v4916_v37 = vcombine.low %v4760_v50, %v4776_v47  ;;  %v4594_v52 = vcombine.low %v4585_v51, %v4593_v57  ;;  %v4595_v24 = vcombine.high %v4585_v51, %v4593_v57  ;;  %v4915_v2 = vrot.slane %v4908_v22, %v6638_v13  ;;  %5812 = vmatprep.subr.bf16.mxu0 %v5948_v30 }
 0x564   : > { %v4882_v41 = vcombine.low %v4865_v6, %v4873_v8 }
 0x565   : > { %v4923_v62 = vrot.slane %v4916_v37, %v6638_v13  ;;  %v4602_v58 = vrot.slane %v4594_v52, %v6646_v26  ;;  %v4609_v31 = vrot.slane %v4595_v24, %v6646_v26 }
 0x566   : > { %v4889_v33 = vrot.slane %v4882_v41, %v6646_v26  ;;  %5813 = vmatpush3.bf16.msra.mxu0 %v5948_v30 }
 0x567   : > { %v4932_v63 = vcombine.low %v4915_v2, %v4923_v62  ;;  %5814 = vmatprep.subr.bf16.mxu0 %v5949_v3  ;;  %v4610_v38 = vcombine.high %v4602_v58, %v6252_v0  ;;  %v4611_v1 = vcombine.high %v4609_v31, %v6252_v0  ;;  %v4782_v4 = vshrl.u32 %v4602_v58, 16 }
 0x568   : > { %v4891_v56 = vcombine.high %v4881_v59, %v4889_v33  ;;  %v7525_v54 = vcombine.low %v4881_v59, %v4889_v33  ;;  %v4798_v47 = vshrl.u32 %v4609_v31, 16 }
 0x569   : > { %v4939_v21 = vrot.slane %v4932_v63, %v6646_v26  ;;  %v4790_v45 = vshrl.u32 %v4610_v38, 16  ;;  %v4806_v51 = vshrl.u32 %v4611_v1, 16 }
 0x56a   : > { %v5045_v48 = vshrl.u32 %v7525_v54, 16  ;;  %v5051_v36 = vshrl.u32 %v4891_v56, 16  ;;  %5815 = vmatpush3.bf16.msra.mxu0 %v5949_v3 }
 0x56b   : > { %v4941_v42 = vcombine.high %v4931_v39, %v4939_v21  ;;  %v7529_v17 = vcombine.low %v4931_v39, %v4939_v21  ;;  %5816 = vmatprep.subr.bf16.mxu0 %v5950_v9 }
 0x56d   : > { %v5050_v43 = vpack.i.b16 %v4941_v42, %v4891_v56  ;;  %v5046_v28 = vshrl.u32 %v7529_v17, 16  ;;  %v5052_v19 = vshrl.u32 %v4941_v42, 16  ;;  %v5044_v14 = vpack.i.b16 %v7529_v17, %v7525_v54 }
 0x56e   : > { %5817 = vmatpush3.bf16.msra.mxu0 %v5950_v9 }
 0x56f   : > { %5070 = vrot.lane.b32.xlu1 %v5050_v43, %s6248_s26  ;;  %v5047_v35 = vpack.i.b16 %v5046_v28, %v5045_v48  ;;  %v7536_v25 = vpack.i.b16 %v5052_v19, %v5051_v36 }
 0x573   : > { %5066 = vrot.lane.b32.xlu1 %v5047_v35, %s6246_s20 }
 0x583   : > { %v4264_v23 = vpop.f32.mrb[68].mxu1 }
 0x584   : > { %v4620_v12 = vpack.c.bf16 %v4264_v23, %v4264_v23  ;;  %v5780_v20 = vpop.f32.mrb[69].mxu1 }
 0x585   : > { %v4267_v40 = vpop.f32.mrb[70].mxu1 }
 0x586   : > { %v4627_v16 = vrot.slane %v4620_v12, %v6638_v13  ;;  %v5781_v60 = vpop.f32.mrb[71].mxu1 }
 0x588   : > { %v4628_v49 = vcombine.low %v4619_v46, %v4627_v16  ;;  %v4629_v10 = vcombine.high %v4619_v46, %v4627_v16 }
 0x58a   : > { %v4636_v32 = vrot.slane %v4628_v49, %v6646_v26  ;;  %v4643_v61 = vrot.slane %v4629_v10, %v6646_v26 }
 0x58c   : > { %v4644_v15 = vcombine.high %v4636_v32, %v6252_v0  ;;  %v4645_v44 = vcombine.high %v4643_v61, %v6252_v0  ;;  %v4780_v50 = vpack.i.b16 %v4636_v32, %v4602_v58  ;;  %v4783_v7 = vshrl.u32 %v4636_v32, 16 }
 0x58d   : > { %v4796_v11 = vpack.i.b16 %v4643_v61, %v4609_v31  ;;  %v4799_v27 = vshrl.u32 %v4643_v61, 16 }
 0x58e   : > { %v4784_v22 = vpack.i.b16 %v4783_v7, %v4782_v4  ;;  %v4788_v29 = vpack.i.b16 %v4644_v15, %v4610_v38  ;;  %v4791_v6 = vshrl.u32 %v4644_v15, 16  ;;  %v4804_v8 = vpack.i.b16 %v4645_v44, %v4611_v1 }
 0x58f   : > { %v4800_v57 = vpack.i.b16 %v4799_v27, %v4798_v47  ;;  %v4807_v34 = vshrl.u32 %v4645_v44, 16  ;;  %v4942_v37 = vcombine.low %v4780_v50, %v4796_v11 }
 0x590   : > { %v4792_v41 = vpack.i.b16 %v4791_v6, %v4790_v45  ;;  %v4950_v52 = vcombine.low %v4788_v29, %v4804_v8 }
 0x591   : > { %v4808_v24 = vpack.i.b16 %v4807_v34, %v4806_v51  ;;  %v4307_v2 = vpop.f32.mrb[56].mxu0  ;;  %v4992_v62 = vcombine.low %v4784_v22, %v4800_v57  ;;  %v4949_v33 = vrot.slane %v4942_v37, %v6638_v13 }
 0x592   : > { %v5786_v59 = vpop.f32.mrb[57].mxu0  ;;  %v4957_v63 = vrot.slane %v4950_v52, %v6638_v13  ;;  %v4646_v48 = vpack.c.bf16 %v4307_v2, %v4307_v2 }
 0x593   : > { %v4310_v53 = vpop.f32.mrb[58].mxu0  ;;  %v5000_v5 = vcombine.low %v4792_v41, %v4808_v24  ;;  %v7556_v21 = vrot.slane %v4992_v62, %v6638_v13 }
 0x594   : > { %v5787_v56 = vpop.f32.mrb[59].mxu0  ;;  %v7553_v39 = vcombine.low %v4949_v33, %v4957_v63  ;;  %v4653_v30 = vrot.slane %v4646_v48, %v6638_v13 }
 0x595   : > { %v7559_v18 = vrot.slane %v5000_v5, %v6638_v13  ;;  %v5951_v5 = vld [vmem:[#allocation10 + $0x30] sm:$0xff]  }
 0x596   : > { %5818 = vmatprep.subr.bf16.mxu0 %v5951_v5 }
 0x597   : > { %v5024_v42 = vcombine.low %v7556_v21, %v7559_v18  ;;  %5819 = vmatpush3.bf16.msra.mxu0 %v5951_v5 }
 0x599   : > { %v4393_v36 = vpop.f32.mrb[60].mxu0 }
 0x59a   : > { %v4654_v43 = vpack.c.bf16 %v4393_v36, %v4393_v36  ;;  %v5798_v28 = vpop.f32.mrb[61].mxu0 }
 0x59b   : > { %v4396_v19 = vpop.f32.mrb[62].mxu0 }
 0x59c   : > { %v4661_v35 = vrot.slane %v4654_v43, %v6638_v13  ;;  %v5799_v3 = vpop.f32.mrb[63].mxu0  ;;  %v4981_v19 = vrot.slane %v7553_v39, %v6646_v26 }
 0x59e   : > { %v4662_v9 = vcombine.low %v4653_v30, %v4661_v35  ;;  %v4663_v55 = vcombine.high %v4653_v30, %v4661_v35  ;;  %v5952_v35 = vld [vmem:[#allocation10 + $0x38] sm:$0xff]  }
 0x59f   : > { %5820 = vmatprep.subr.bf16.mxu0 %v5952_v35 }
 0x5a0   : > { %v4670_v31 = vrot.slane %v4662_v9, %v6646_v26  ;;  %v4677_v61 = vrot.slane %v4663_v55, %v6646_v26  ;;  %5821 = vmatpush3.bf16.msra.mxu0 %v5952_v35 }
 0x5a2   : > { %v4678_v15 = vcombine.high %v4670_v31, %v6252_v0  ;;  %v4679_v7 = vcombine.high %v4677_v61, %v6252_v0  ;;  %v4814_v45 = vshrl.u32 %v4670_v31, 16  ;;  %v4830_v6 = vshrl.u32 %v4677_v61, 16 }
 0x5a4   : > { %v4822_v29 = vshrl.u32 %v4678_v15, 16  ;;  %v4838_v52 = vshrl.u32 %v4679_v7, 16 }
 0x5b5   : > { %v4350_v23 = vpop.f32.mrb[72].mxu1 }
 0x5b6   : > { %v5792_v12 = vpop.f32.mrb[73].mxu1  ;;  %v4680_v40 = vpack.c.bf16 %v4350_v23, %v4350_v23  ;;  %v5031_v23 = vrot.slane %v5024_v42, %v6646_v26 }
 0x5b7   : > { %v4353_v20 = vpop.f32.mrb[74].mxu1 }
 0x5b8   : > { %v5793_v58 = vpop.f32.mrb[75].mxu1  ;;  %v4687_v10 = vrot.slane %v4680_v40, %v6638_v13 }
 0x5bd   : > { %v4436_v46 = vpop.f32.mrb[76].mxu1 }
 0x5be   : > { %v4688_v16 = vpack.c.bf16 %v4436_v46, %v4436_v46  ;;  %v5804_v60 = vpop.f32.mrb[77].mxu1 }
 0x5bf   : > { %v4439_v49 = vpop.f32.mrb[78].mxu1 }
 0x5c0   : > { %v4695_v38 = vrot.slane %v4688_v16, %v6638_v13  ;;  %v5805_v32 = vpop.f32.mrb[79].mxu1 }
 0x5c2   : > { %v4696_v1 = vcombine.low %v4687_v10, %v4695_v38  ;;  %v4697_v4 = vcombine.high %v4687_v10, %v4695_v38 }
 0x5c4   : > { %v4704_v44 = vrot.slane %v4696_v1, %v6646_v26  ;;  %v4711_v50 = vrot.slane %v4697_v4, %v6646_v26 }
 0x5c6   : > { %v4712_v47 = vcombine.high %v4704_v44, %v6252_v0  ;;  %v4713_v11 = vcombine.high %v4711_v50, %v6252_v0  ;;  %v4812_v27 = vpack.i.b16 %v4704_v44, %v4670_v31  ;;  %v4815_v22 = vshrl.u32 %v4704_v44, 16  ;;  %v5451_v44 = vld [vmem:[%s7660_s7] ss:$0 sm:$0xff] }
 0x5c7   : > { %v4828_v8 = vpack.i.b16 %v4711_v50, %v4677_v61  ;;  %v4831_v51 = vshrl.u32 %v4711_v50, 16 }
 0x5c8   : > { %v4816_v57 = vpack.i.b16 %v4815_v22, %v4814_v45  ;;  %v4820_v34 = vpack.i.b16 %v4712_v47, %v4678_v15  ;;  %v4823_v37 = vshrl.u32 %v4712_v47, 16  ;;  %v4836_v41 = vpack.i.b16 %v4713_v11, %v4679_v7 }
 0x5c9   : > { %v4832_v24 = vpack.i.b16 %v4831_v51, %v4830_v6  ;;  %v4839_v2 = vshrl.u32 %v4713_v11, 16  ;;  %v4958_v62 = vcombine.low %v4812_v27, %v4828_v8 }
 0x5ca   : > { %v4824_v59 = vpack.i.b16 %v4823_v37, %v4822_v29  ;;  %v4966_v33 = vcombine.low %v4820_v34, %v4836_v41 }
 0x5cb   : > { %v4840_v63 = vpack.i.b16 %v4839_v2, %v4838_v52  ;;  %v5008_v53 = vcombine.low %v4816_v57, %v4832_v24  ;;  %v4965_v0 = vrot.slane %v4958_v62, %v6638_v13 }
 0x5cc   : > { %v4973_v56 = vrot.slane %v4966_v33, %v6638_v13 }
 0x5cd   : > { %v5016_v48 = vcombine.low %v4824_v59, %v4840_v63  ;;  %v5015_v43 = vrot.slane %v5008_v53, %v6638_v13 }
 0x5ce   : > { %v4982_v36 = vcombine.low %v4965_v0, %v4973_v56 }
 0x5cf   : > { %v5023_v28 = vrot.slane %v5016_v48, %v6638_v13 }
 0x5d0   : > { %v4989_v30 = vrot.slane %v4982_v36, %v6646_v26 }
 0x5d1   : > { %v5032_v3 = vcombine.low %v5015_v43, %v5023_v28 }
 0x5d2   : > { %v4991_v9 = vcombine.high %v4981_v19, %v4989_v30  ;;  %v4990_v55 = vcombine.low %v4981_v19, %v4989_v30 }
 0x5d3   : > { %v5039_v12 = vrot.slane %v5032_v3, %v6646_v26 }
 0x5d4   : > { %v5057_v58 = vshrl.u32 %v4990_v55, 16  ;;  %v5063_v40 = vshrl.u32 %v4991_v9, 16 }
 0x5d5   : > { %v5041_v20 = vcombine.high %v5031_v23, %v5039_v12  ;;  %v5040_v13 = vcombine.low %v5031_v23, %v5039_v12 }
 0x5d7   : > { %v5062_v39 = vpack.i.b16 %v5041_v20, %v4991_v9  ;;  %v5058_v46 = vshrl.u32 %v5040_v13, 16  ;;  %v5064_v16 = vshrl.u32 %v5041_v20, 16  ;;  %v5056_v60 = vpack.i.b16 %v5040_v13, %v4990_v55 }
 0x5d9   : > { %5072 = vrot.lane.b32.xlu1 %v5062_v39, %s6248_s26  ;;  %v5059_v31 = vpack.i.b16 %v5058_v46, %v5057_v58  ;;  %v5065_v49 = vpack.i.b16 %v5064_v16, %v5063_v40 }
 0x5db   : > { %5068 = vrot.lane.b32.xlu0 %v5059_v31, %s6246_s20  ;;  %s6254_s20 = smov [#allocation11]  }
 0x5dd   : > { %5076 = vrot.lane.b32.xlu1 %v5065_v49, %s6247_s27 }
 0x5df   : > { %5074 = vrot.lane.b32.xlu0 %v7536_v25, %s6247_s27  ;;  %s6163_s27 = sshll.u32 %s6254_s20, 4  ;;  %s6164_s27 = int_to_ptr.vmem [resolvable:$false] %s6163_s27 }
 0x5e0   : > { %s6165_s26 = scalar_lea.vmem %s6164_s27, 1024  ;;  %p6166_p2 = scmp.lt.s32.totalorder %s7602_s12, %s6164_s27 }
 0x5e1   : > { %v5071_v26 = vpop.permute.xlu1 %5070  ;;  %p6167_p13 = scmp.lt.s32.totalorder %s6165_s26, %s6159_s13 }
 0x5e3   : > { %p6168_p10 = por %p6167_p13, %p6166_p2 }
 0x5e5   : > { %v5067_v21 = vpop.permute.xlu1 %5066  ;;  %p6169_p0 = pnand %p6168_p10, %p6162_p1 }
 0x5e6   : > { %v5080_v10 = vsel %vm2860_vm1, %v5044_v14, %v5067_v21 }
 0x5e7   : > { %v5086_v4 = vsel %vm5084_vm3, %v5080_v10, %v5071_v26 }
 0x64b   : > { %v5073_v18 = vpop.permute.xlu1 %5072 }
 0x64d   : > { %v5069_v42 = vpop.permute.xlu0 %5068 }
 0x64e   : > { %v5083_v38 = vsel %vm2860_vm1, %v5056_v60, %v5069_v42 }
 0x64f   : > { %v5077_v32 = vpop.permute.xlu1 %5076  ;;  %v5088_v61 = vsel %vm5084_vm3, %v5083_v38, %v5073_v18 }
 0x650   : > { %v5094_v15 = vsel %vm5089_vm4, %v5088_v61, %v5077_v32 }
 0x651   : > { %v5075_v1 = vpop.permute.xlu0 %5074 }
 0x652   : > { %v5091_v25 = vsel %vm5089_vm4, %v5086_v4, %v5075_v1 }
 0x653   : > { %5822 = vmatprep.mubr.bf16.mxu0 %v5091_v25 }
 0x654   : > { %5823 = vmatmul.mubr.bf16.vlgmr.msra.gmra.mrb[64].mxu0 %v5094_v15 }
 0x727   : > { %v5824_v54 = vpop.f32.mrb[64].mxu0 }
 0x728   : > { %v5210_v17 = vadd.f32 %v5824_v54, %v5451_v44  ;;  %v5201_v14 = vpop.f32.mrb[65].mxu0 }
 0x729   : > { %v5202_v50 = vadd.f32 %v5451_v44, %v5201_v14  ;;  %v5825_v7 = vpop.f32.mrb[66].mxu0 }
 0x72a   : > { %5218 = vst [vmem:[%s382_s15 + $0x10] sm:$0xff] %v5210_v17  ;;  %v5213_v45 = vadd.f32 %v5825_v7, %v5451_v44  ;;  %v5204_v47 = vpop.f32.mrb[67].mxu0 }
 0x72b   : > { %5216 = vst [vmem:[%s382_s15] sm:$0xff] %v5202_v50  ;;  %v5205_v11 = vadd.f32 %v5451_v44, %v5204_v47 }
 0x72c   : > { %5219 = vst [vmem:[%s382_s15 + $0x18] sm:$0xff] %v5213_v45 }
 0x72d   : > { %5217 = vst [vmem:[%s382_s15 + $0x8] sm:$0xff] %v5205_v11 }
 0x72e   : > { %6172 = shalt.err (!%p6169_p0)
}
 0x72f   : > { %s6173_s10 = scalar_lea.hbm %s7607_s17, 512  ;;  %s6177_s22 = scalar_lea.hbm %s7661_s8, 1024 }
 0x730   : > { %p6174_p4 = scmp.ne.s32.totalorder %s7607_s17, %s6173_s10  ;;  %p6178_p6 = scmp.lt.u32.totalorder %s7607_s17, %s7661_s8 }
 0x731   : > { %p6179_p3 = scmp.lt.u32.totalorder %s6177_s22, %s6173_s10  ;;  %p6181_p7 = scmp.lt.u32.totalorder %s6173_s10, %s7607_s17 }
 0x732   : > { %p6175_p11 = pnand %p6174_p4, %p6473_p9 }
 0x733   : > { %p6180_p5 = por %p6179_p3, %p6178_p6 }
 0x734   : > { %p6176_p8 = pneg %p6175_p11 }
 0x735   : > { %p6182_p12 = por %p6181_p7, %p6180_p5 }
 0x737   : > { %p6183_p1 = pnand %p6182_p12, %p6176_p8 }
 0x739   : > { %6186 = shalt.err (!%p6183_p1)
}
 0x73a   : > { %s6255_s19 = smov 128   ;;  %s6256_s21 = smov 8  }
 0x73b   : > { %5844 = dma.vmem_to_hbm [thread:$0]  (%p6473_p9), %s7602_s12, 512, %s7607_s17, %s7611_s9, %s6255_s19, %s6255_s19, %s6256_s21  }
 0x73c PF: > { %s7685_s11 = sld [smem:[#allocation17_spill]]  ;;  %s7686_s13 = sld [smem:[#allocation18_spill]] }
 0x73d   : > { %p7688_p13 = scmp.ge.s32.totalorder %s6237_s30, 2 }
 0x742   : > { %s5249_s20 = sand.u32 1, %s7685_s11   ;;  %p7687_p2 = scmp.ne.s32.totalorder %s7686_s13, 0 }
 0x743   : > { %s5250_s27 = scalar_lea.sflag [#allocation4], %s5249_s20 }
 0x744   : > { %p5864_p10 = pnand %p7688_p13, %p7687_p2 }
 0x746   : > { %6220 = dma.done.wait (!%p5864_p10), %s5250_s27, 512  }
 0x747   : > { %6222 = vsyncadd (!%p5864_p10), %s5250_s27, 4294966784  ;;  %p23_p0 = scmp.ge.s32.totalorder %s6463_s16, 4   ;;  %s7689_s27 = smov %s6229_s28 }
 0x748   : > { %s7690_s28 = smov %s6233_s29  ;;  %s7691_s29 = smov %s6479_s24 }
 0x749   : > { %s7692_s30 = smov %s6463_s16  ;;  %25 = sbr.rel (!%p23_p0) target bundleno = 7 (0x7), region = 114 }
 0x750   :  { %5255 = vsyncpa [#allocation3], 1 }
 0x751   :  { %5257 = vsyncpa [#allocation3 + $0x1], 1 }
 0x752   :  { %5258 = vsyncpa [#allocation6], 1 }
 0x753   :  { %5260 = vsyncpa [#allocation6 + $0x1], 1 }
 0x754   :  { %5261 = vsyncpa [#allocation9], 1 }
 0x755   :  { %5262 = vsyncpa [#allocation4], 1 }
 0x756   :  { %5264 = vsyncpa [#allocation4 + $0x1], 1 }

</bundles_post_ra>
